<compile_context>
chip_gen: v7x
topology: tpu7x:2x2x1
jax: 0.10.0
libtpu: 0.0.40
codegen_flags: <defaults>
</compile_context>

<pallas_src>
import jax
import jax.numpy as jnp
from jax.experimental import pallas as pl
from jax.experimental.pallas import tpu as pltpu

# Layer sizes from the PyTorch module.
DIMS = [5, 64, 128, 256, 128, 64, 1]
_IN_PAD = 8   # feature dim 5 padded to 8; column 5 is the ones-carrier for the folded layer-1 bias


def _chip_config():
    """(epilogue_dtype, want_even_grid) based on the local TPU generation."""
    try:
        kind = jax.devices()[0].device_kind.lower()
    except Exception:
        kind = ""
    has_bf16_vpu = ("v6" in kind) or ("v7" in kind)   # v5e/v5p/v4 VPU has no bf16 path
    epi_dtype = jnp.bfloat16 if has_bf16_vpu else jnp.float32
    even_grid = "v7" in kind                          # v7x: 2 TensorCores share the parallel axis
    return epi_dtype, even_grid


def _make_kernel(epi_dtype):
    """Build the fused 6-layer MLP kernel for one batch tile (fully VMEM-resident)."""

    def kernel(x_ref, w1, w2, b2, w3, b3, w4, b4, w5, b5, w6, b6, o_ref):
        # x_ref : (8, tile_n) bf16  -- batch on the 128-lane axis, row 5 == 1.0
        # wK    : (out, in)   bf16  -- PyTorch orientation, resident every step
        # bK    : (out, 1)    epi_dtype (b6 is f32)
        # o_ref : (1, tile_n) f32   -- lane-dense output row

        def layer(h, w_ref, b_ref):
            # bf16 MXU matmul, f32 accumulation; epilogue in epi_dtype.
            z = jnp.dot(w_ref[...], h, preferred_element_type=jnp.float32)
            z = z.astype(epi_dtype)
            if b_ref is not None:
                z = z + b_ref[...]
            return jnp.maximum(z, 0).astype(jnp.bfloat16)

        h = x_ref[...]                 # (8,   tile_n)
        h = layer(h, w1, None)         # (64,  tile_n)  bias folded into w1
        h = layer(h, w2, b2)           # (128, tile_n)
        h = layer(h, w3, b3)           # (256, tile_n)
        h = layer(h, w4, b4)           # (128, tile_n)
        h = layer(h, w5, b5)           # (64,  tile_n)
        # Final layer (1 output row): epilogue in f32, lane-dense store.
        z = jnp.dot(w6[...], h, preferred_element_type=jnp.float32)
        z = z + b6[...].astype(jnp.float32)
        o_ref[...] = jnp.maximum(z, 0.0)

    return kernel


def pack_params(params, epi_dtype=None):
    """Pre-pack PyTorch-layout (W(out,in), b(out,)) params for the kernel (done once):
    bf16 weights; layer-1 bias folded into an augmented (64, 8) weight; remaining
    biases reshaped (out, 1) in the epilogue dtype (last bias stays f32)."""
    if epi_dtype is None:
        epi_dtype, _ = _chip_config()
    (w1, b1) = params[0]
    rest = params[1:]
    w1_aug = jnp.concatenate(
        [w1, b1.reshape(-1, 1),
         jnp.zeros((DIMS[1], _IN_PAD - DIMS[0] - 1), w1.dtype)], axis=1)   # (64, 8)
    flat = [w1_aug.astype(jnp.bfloat16)]
    for li, (w, b) in enumerate(rest):
        flat.append(w.astype(jnp.bfloat16))
        b_dtype = jnp.float32 if li == len(rest) - 1 else epi_dtype
        flat.append(b.reshape(-1, 1).astype(b_dtype))
    return tuple(flat)


def _choose_tile_n(n, cap=4096):
    """Biggest tile (<=4096, VMEM-safe on all generations) keeping >=2 grid steps."""
    tile = cap
    while tile > 128 and pl.cdiv(n, tile) < 2:
        tile //= 2
    return tile


def neu_forward(x, packed_params, *, tile_n=None, even_grid=None):
    """x: (N, 5) float32.  packed_params: output of pack_params()."""
    n, d_in = x.shape
    assert d_in == DIMS[0]

    epi_dtype = packed_params[2].dtype      # b2's dtype == epilogue dtype chosen at pack time
    if even_grid is None:
        _, even_grid = _chip_config()

    if tile_n is None:
        tile_n = _choose_tile_n(n)
    tile_n = max(128, ((int(tile_n) + 127) // 128) * 128)

    num_tiles = pl.cdiv(n, tile_n)
    if even_grid and num_tiles % 2:
        num_tiles += 1                      # balance v7x's 2 TensorCores
    n_pad = num_tiles * tile_n

    # Augment features [x | 1 | 0 | 0], zero-pad the ragged batch, transpose so the
    # batch rides the 128-lane axis, cast to bf16.  Under jit this fuses into one copy.
    ones = jnp.ones((n, 1), x.dtype)
    zeros = jnp.zeros((n, _IN_PAD - DIMS[0] - 1), x.dtype)
    x_aug = jnp.concatenate([x, ones, zeros], axis=1)                        # (n, 8)
    x_t = jnp.pad(x_aug, ((0, n_pad - n), (0, 0))).T.astype(jnp.bfloat16)    # (8, n_pad)

    in_specs = [pl.BlockSpec((_IN_PAD, tile_n), lambda i: (0, i))]
    for p in packed_params:
        # Full-array blocks with constant index_map: fetched once, the pipeline skips
        # the re-DMA, so weights/biases stay VMEM-resident across all grid steps.
        in_specs.append(pl.BlockSpec(p.shape, lambda i: (0, 0)))
    out_spec = pl.BlockSpec((1, tile_n), lambda i: (0, i))

    flops_per_row = 2 * sum(a * b for a, b in zip(DIMS[:-1], DIMS[1:]))      # ~164.6 kFLOP/row
    param_bytes = sum(p.size * p.dtype.itemsize for p in packed_params)
    cost = pl.CostEstimate(
        flops=flops_per_row * n_pad,
        transcendentals=0,
        bytes_accessed=n_pad * (_IN_PAD * 2 + 4) + param_bytes,
    )

    out = pl.pallas_call(
        _make_kernel(epi_dtype),
        out_shape=jax.ShapeDtypeStruct((1, n_pad), jnp.float32),
        grid_spec=pltpu.PrefetchScalarGridSpec(
            num_scalar_prefetch=0,
            grid=(num_tiles,),
            in_specs=in_specs,
            out_specs=out_spec,
        ),
        compiler_params=pltpu.CompilerParams(
            dimension_semantics=("parallel",),
            vmem_limit_bytes=32 * 1024 * 1024,
        ),
        cost_estimate=cost,
    )(x_t, *packed_params)

    return out[0, :n].reshape(n, 1)


def init_params(key):
    """PyTorch-style Linear init: U(-1/sqrt(fan_in), 1/sqrt(fan_in)); W is (out, in)."""
    params = []
    for fan_in, fan_out in zip(DIMS[:-1], DIMS[1:]):
        key, kw, kb = jax.random.split(key, 3)
        bound = 1.0 / (fan_in ** 0.5)
        w = jax.random.uniform(kw, (fan_out, fan_in), jnp.float32, -bound, bound)
        b = jax.random.uniform(kb, (fan_out,), jnp.float32, -bound, bound)
        params.append((w, b))
    return params


def neu_reference(x, params, matmul_dtype=jnp.float32, epilogue_dtype=jnp.float32):
    """Pure-JAX reference, ReLU(x @ W.T + b) per layer, with configurable compute dtypes."""
    h = x
    nl = len(params)
    for i, (w, b) in enumerate(params):
        z = jnp.dot(h.astype(matmul_dtype), w.astype(matmul_dtype).T,
                    preferred_element_type=jnp.float32)
        ed = jnp.float32 if i == nl - 1 else epilogue_dtype
        z = z.astype(ed) + b.astype(ed)[None, :]
        h = jnp.maximum(z, 0).astype(jnp.float32)
    return h


if __name__ == "__main__":
    key = jax.random.PRNGKey(0)
    key, kx = jax.random.split(key)

    batch = 300   # deliberately NOT a multiple of the tile -> exercises the padding path
    x = jax.random.normal(kx, (batch, DIMS[0]), jnp.float32)
    params = init_params(key)

    epi_dtype, _ = _chip_config()
    packed = pack_params(params, epi_dtype)     # one-time bf16 packing (bias folded into W1)

    fwd = jax.jit(neu_forward)
    out = jax.block_until_ready(fwd(x, packed))
    assert out.shape == (batch, 1)

    # Kernel uses bf16 matmuls with f32 accumulation (+ bf16 epilogue on v6e/v7x):
    # tight check vs a precision-matched reference, loose sanity check vs pure f32.
    ref_match = neu_reference(x, params, matmul_dtype=jnp.bfloat16, epilogue_dtype=epi_dtype)
    ref_f32 = neu_reference(x, params)
    assert jnp.allclose(out, ref_match, atol=3e-2, rtol=3e-2), "mismatch vs matched-precision reference"
    assert jnp.allclose(out, ref_f32, atol=1.5e-1, rtol=1.5e-1), "mismatch vs f32 reference"

    print("KERNEL_OK")
</pallas_src>

<mosaic_0001>
module attributes {stable_mosaic.version = 11 : i64} {
  func.func @kernel(%arg0: i32, %arg1: memref<8x256xbf16, #tpu.memory_space<vmem>>, %arg2: memref<64x8xbf16, #tpu.memory_space<vmem>>, %arg3: memref<128x64xbf16, #tpu.memory_space<vmem>>, %arg4: memref<128x1xf32, #tpu.memory_space<vmem>>, %arg5: memref<256x128xbf16, #tpu.memory_space<vmem>>, %arg6: memref<256x1xf32, #tpu.memory_space<vmem>>, %arg7: memref<128x256xbf16, #tpu.memory_space<vmem>>, %arg8: memref<128x1xf32, #tpu.memory_space<vmem>>, %arg9: memref<64x128xbf16, #tpu.memory_space<vmem>>, %arg10: memref<64x1xf32, #tpu.memory_space<vmem>>, %arg11: memref<1x64xbf16, #tpu.memory_space<vmem>>, %arg12: memref<1x1xf32, #tpu.memory_space<vmem>>, %arg13: memref<1x256xf32, #tpu.memory_space<vmem>>) attributes {dimension_semantics = [#tpu.dimension_semantics<parallel>], iteration_bounds = array<i64: 2>, scalar_prefetch = 0 : i64, scratch_operands = 0 : i64, tpu.core_type = #tpu.core_type<tc>, window_params = [{transform_indices = @transform_0, window_bounds = array<i64: 8, 256>}, {pipeline_mode = #tpu.pipeline_mode<synchronous>, transform_indices = @transform_1, window_bounds = array<i64: 64, 8>}, {pipeline_mode = #tpu.pipeline_mode<synchronous>, transform_indices = @transform_2, window_bounds = array<i64: 128, 64>}, {pipeline_mode = #tpu.pipeline_mode<synchronous>, transform_indices = @transform_3, window_bounds = array<i64: 128, 1>}, {pipeline_mode = #tpu.pipeline_mode<synchronous>, transform_indices = @transform_4, window_bounds = array<i64: 256, 128>}, {pipeline_mode = #tpu.pipeline_mode<synchronous>, transform_indices = @transform_5, window_bounds = array<i64: 256, 1>}, {pipeline_mode = #tpu.pipeline_mode<synchronous>, transform_indices = @transform_6, window_bounds = array<i64: 128, 256>}, {pipeline_mode = #tpu.pipeline_mode<synchronous>, transform_indices = @transform_7, window_bounds = array<i64: 128, 1>}, {pipeline_mode = #tpu.pipeline_mode<synchronous>, transform_indices = @transform_8, window_bounds = array<i64: 64, 128>}, {pipeline_mode = #tpu.pipeline_mode<synchronous>, transform_indices = @transform_9, window_bounds = array<i64: 64, 1>}, {pipeline_mode = #tpu.pipeline_mode<synchronous>, transform_indices = @transform_10, window_bounds = array<i64: 1, 64>}, {pipeline_mode = #tpu.pipeline_mode<synchronous>, transform_indices = @transform_11, window_bounds = array<i64: 1, 1>}, {transform_indices = @transform_12, window_bounds = array<i64: 1, 256>}]} {
    %c0 = arith.constant 0 : index
    %c0_0 = arith.constant 0 : index
    %0 = vector.load %arg1[%c0, %c0_0] : memref<8x256xbf16, #tpu.memory_space<vmem>>, vector<8x256xbf16>
    %c0_1 = arith.constant 0 : index
    %c0_2 = arith.constant 0 : index
    %1 = vector.load %arg2[%c0_1, %c0_2] : memref<64x8xbf16, #tpu.memory_space<vmem>>, vector<64x8xbf16>
    %cst = arith.constant dense<0.000000e+00> : vector<64x256xf32>
    %2 = tpu.matmul %1, %0, %cst {dimension_numbers = #tpu.dot_dimension_numbers<[1], [0], [0], [1], [0, 0, 1, 1], [], []>} : vector<64x8xbf16>, vector<8x256xbf16>, vector<64x256xf32> -> vector<64x256xf32>
    %cst_3 = arith.constant 0.000000e+00 : f32
    %3 = vector.broadcast %cst_3 : f32 to vector<64x256xf32>
    %4 = arith.maximumf %2, %3 : vector<64x256xf32>
    %5 = arith.truncf %4 : vector<64x256xf32> to vector<64x256xbf16>
    %c0_4 = arith.constant 0 : index
    %c0_5 = arith.constant 0 : index
    %6 = vector.load %arg3[%c0_4, %c0_5] : memref<128x64xbf16, #tpu.memory_space<vmem>>, vector<128x64xbf16>
    %cst_6 = arith.constant dense<0.000000e+00> : vector<128x256xf32>
    %7 = tpu.matmul %6, %5, %cst_6 {dimension_numbers = #tpu.dot_dimension_numbers<[1], [0], [0], [1], [0, 0, 1, 1], [], []>} : vector<128x64xbf16>, vector<64x256xbf16>, vector<128x256xf32> -> vector<128x256xf32>
    %c0_7 = arith.constant 0 : index
    %c0_8 = arith.constant 0 : index
    %8 = vector.load %arg4[%c0_7, %c0_8] : memref<128x1xf32, #tpu.memory_space<vmem>>, vector<128x1xf32>
    %9 = vector.broadcast %8 : vector<128x1xf32> to vector<128x256xf32>
    %10 = arith.addf %7, %9 : vector<128x256xf32>
    %cst_9 = arith.constant 0.000000e+00 : f32
    %11 = vector.broadcast %cst_9 : f32 to vector<128x256xf32>
    %12 = arith.maximumf %10, %11 : vector<128x256xf32>
    %13 = arith.truncf %12 : vector<128x256xf32> to vector<128x256xbf16>
    %c0_10 = arith.constant 0 : index
    %c0_11 = arith.constant 0 : index
    %14 = vector.load %arg5[%c0_10, %c0_11] : memref<256x128xbf16, #tpu.memory_space<vmem>>, vector<256x128xbf16>
    %cst_12 = arith.constant dense<0.000000e+00> : vector<256x256xf32>
    %15 = tpu.matmul %14, %13, %cst_12 {dimension_numbers = #tpu.dot_dimension_numbers<[1], [0], [0], [1], [0, 0, 1, 1], [], []>} : vector<256x128xbf16>, vector<128x256xbf16>, vector<256x256xf32> -> vector<256x256xf32>
    %c0_13 = arith.constant 0 : index
    %c0_14 = arith.constant 0 : index
    %16 = vector.load %arg6[%c0_13, %c0_14] : memref<256x1xf32, #tpu.memory_space<vmem>>, vector<256x1xf32>
    %17 = vector.broadcast %16 : vector<256x1xf32> to vector<256x256xf32>
    %18 = arith.addf %15, %17 : vector<256x256xf32>
    %cst_15 = arith.constant 0.000000e+00 : f32
    %19 = vector.broadcast %cst_15 : f32 to vector<256x256xf32>
    %20 = arith.maximumf %18, %19 : vector<256x256xf32>
    %21 = arith.truncf %20 : vector<256x256xf32> to vector<256x256xbf16>
    %c0_16 = arith.constant 0 : index
    %c0_17 = arith.constant 0 : index
    %22 = vector.load %arg7[%c0_16, %c0_17] : memref<128x256xbf16, #tpu.memory_space<vmem>>, vector<128x256xbf16>
    %cst_18 = arith.constant dense<0.000000e+00> : vector<128x256xf32>
    %23 = tpu.matmul %22, %21, %cst_18 {dimension_numbers = #tpu.dot_dimension_numbers<[1], [0], [0], [1], [0, 0, 1, 1], [], []>} : vector<128x256xbf16>, vector<256x256xbf16>, vector<128x256xf32> -> vector<128x256xf32>
    %c0_19 = arith.constant 0 : index
    %c0_20 = arith.constant 0 : index
    %24 = vector.load %arg8[%c0_19, %c0_20] : memref<128x1xf32, #tpu.memory_space<vmem>>, vector<128x1xf32>
    %25 = vector.broadcast %24 : vector<128x1xf32> to vector<128x256xf32>
    %26 = arith.addf %23, %25 : vector<128x256xf32>
    %cst_21 = arith.constant 0.000000e+00 : f32
    %27 = vector.broadcast %cst_21 : f32 to vector<128x256xf32>
    %28 = arith.maximumf %26, %27 : vector<128x256xf32>
    %29 = arith.truncf %28 : vector<128x256xf32> to vector<128x256xbf16>
    %c0_22 = arith.constant 0 : index
    %c0_23 = arith.constant 0 : index
    %30 = vector.load %arg9[%c0_22, %c0_23] : memref<64x128xbf16, #tpu.memory_space<vmem>>, vector<64x128xbf16>
    %cst_24 = arith.constant dense<0.000000e+00> : vector<64x256xf32>
    %31 = tpu.matmul %30, %29, %cst_24 {dimension_numbers = #tpu.dot_dimension_numbers<[1], [0], [0], [1], [0, 0, 1, 1], [], []>} : vector<64x128xbf16>, vector<128x256xbf16>, vector<64x256xf32> -> vector<64x256xf32>
    %c0_25 = arith.constant 0 : index
    %c0_26 = arith.constant 0 : index
    %32 = vector.load %arg10[%c0_25, %c0_26] : memref<64x1xf32, #tpu.memory_space<vmem>>, vector<64x1xf32>
    %33 = vector.broadcast %32 : vector<64x1xf32> to vector<64x256xf32>
    %34 = arith.addf %31, %33 : vector<64x256xf32>
    %cst_27 = arith.constant 0.000000e+00 : f32
    %35 = vector.broadcast %cst_27 : f32 to vector<64x256xf32>
    %36 = arith.maximumf %34, %35 : vector<64x256xf32>
    %37 = arith.truncf %36 : vector<64x256xf32> to vector<64x256xbf16>
    %c0_28 = arith.constant 0 : index
    %c0_29 = arith.constant 0 : index
    %38 = vector.load %arg11[%c0_28, %c0_29] : memref<1x64xbf16, #tpu.memory_space<vmem>>, vector<1x64xbf16>
    %cst_30 = arith.constant dense<0.000000e+00> : vector<1x256xf32>
    %39 = tpu.matmul %38, %37, %cst_30 {dimension_numbers = #tpu.dot_dimension_numbers<[1], [0], [0], [1], [0, 0, 1, 1], [], []>} : vector<1x64xbf16>, vector<64x256xbf16>, vector<1x256xf32> -> vector<1x256xf32>
    %c0_31 = arith.constant 0 : index
    %c0_32 = arith.constant 0 : index
    %40 = vector.load %arg12[%c0_31, %c0_32] : memref<1x1xf32, #tpu.memory_space<vmem>>, vector<1x1xf32>
    %41 = vector.broadcast %40 : vector<1x1xf32> to vector<1x256xf32>
    %42 = arith.addf %39, %41 : vector<1x256xf32>
    %cst_33 = arith.constant 0.000000e+00 : f32
    %43 = vector.broadcast %cst_33 : f32 to vector<1x256xf32>
    %44 = arith.maximumf %42, %43 : vector<1x256xf32>
    %c0_34 = arith.constant 0 : index
    %c0_35 = arith.constant 0 : index
    %45 = vector.load %arg13[%c0_34, %c0_35] : memref<1x256xf32, #tpu.memory_space<vmem>>, vector<1x256xf32>
    tpu.vector_store %arg13[%c0_34, %c0_35], %44 {strides = array<i32>} : memref<1x256xf32, #tpu.memory_space<vmem>>, vector<1x256xf32>,
    return
  }
  func.func @transform_0(%arg0: i32) -> (i32, i32) {
    %c0_i32 = arith.constant 0 : i32
    %c0_i32_0 = arith.constant 0 : i32
    return %c0_i32, %arg0 : i32, i32
  }
  func.func @transform_1(%arg0: i32) -> (i32, i32) {
    %c0_i32 = arith.constant 0 : i32
    %c0_i32_0 = arith.constant 0 : i32
    %c0_i32_1 = arith.constant 0 : i32
    return %c0_i32, %c0_i32_0 : i32, i32
  }
  func.func @transform_2(%arg0: i32) -> (i32, i32) {
    %c0_i32 = arith.constant 0 : i32
    %c0_i32_0 = arith.constant 0 : i32
    %c0_i32_1 = arith.constant 0 : i32
    return %c0_i32, %c0_i32_0 : i32, i32
  }
  func.func @transform_3(%arg0: i32) -> (i32, i32) {
    %c0_i32 = arith.constant 0 : i32
    %c0_i32_0 = arith.constant 0 : i32
    %c0_i32_1 = arith.constant 0 : i32
    return %c0_i32, %c0_i32_0 : i32, i32
  }
  func.func @transform_4(%arg0: i32) -> (i32, i32) {
    %c0_i32 = arith.constant 0 : i32
    %c0_i32_0 = arith.constant 0 : i32
    %c0_i32_1 = arith.constant 0 : i32
    return %c0_i32, %c0_i32_0 : i32, i32
  }
  func.func @transform_5(%arg0: i32) -> (i32, i32) {
    %c0_i32 = arith.constant 0 : i32
    %c0_i32_0 = arith.constant 0 : i32
    %c0_i32_1 = arith.constant 0 : i32
    return %c0_i32, %c0_i32_0 : i32, i32
  }
  func.func @transform_6(%arg0: i32) -> (i32, i32) {
    %c0_i32 = arith.constant 0 : i32
    %c0_i32_0 = arith.constant 0 : i32
    %c0_i32_1 = arith.constant 0 : i32
    return %c0_i32, %c0_i32_0 : i32, i32
  }
  func.func @transform_7(%arg0: i32) -> (i32, i32) {
    %c0_i32 = arith.constant 0 : i32
    %c0_i32_0 = arith.constant 0 : i32
    %c0_i32_1 = arith.constant 0 : i32
    return %c0_i32, %c0_i32_0 : i32, i32
  }
  func.func @transform_8(%arg0: i32) -> (i32, i32) {
    %c0_i32 = arith.constant 0 : i32
    %c0_i32_0 = arith.constant 0 : i32
    %c0_i32_1 = arith.constant 0 : i32
    return %c0_i32, %c0_i32_0 : i32, i32
  }
  func.func @transform_9(%arg0: i32) -> (i32, i32) {
    %c0_i32 = arith.constant 0 : i32
    %c0_i32_0 = arith.constant 0 : i32
    %c0_i32_1 = arith.constant 0 : i32
    return %c0_i32, %c0_i32_0 : i32, i32
  }
  func.func @transform_10(%arg0: i32) -> (i32, i32) {
    %c0_i32 = arith.constant 0 : i32
    %c0_i32_0 = arith.constant 0 : i32
    %c0_i32_1 = arith.constant 0 : i32
    return %c0_i32, %c0_i32_0 : i32, i32
  }
  func.func @transform_11(%arg0: i32) -> (i32, i32) {
    %c0_i32 = arith.constant 0 : i32
    %c0_i32_0 = arith.constant 0 : i32
    %c0_i32_1 = arith.constant 0 : i32
    return %c0_i32, %c0_i32_0 : i32, i32
  }
  func.func @transform_12(%arg0: i32) -> (i32, i32) {
    %c0_i32 = arith.constant 0 : i32
    %c0_i32_0 = arith.constant 0 : i32
    return %c0_i32, %arg0 : i32, i32
  }
}

</mosaic_0001>

<bundles_post_ra>
// kernel: neu_forward.1
= control target key start
LH: loop header
LB: loop body
LE: loop exit
PB: predicated region body
PF: predicated region fallthrough
CT: control target
= control target key end

     0   :  { %s2398_s23 = smov 0   ;;  %s2830_s0 = inlined_call_operand.vmem [shape: bf16[8,512], index: 0, kind: input, shape index: {}]   ;;  %s2831_s1 = inlined_call_operand.vmem [shape: bf16[64,8], index: 1, kind: input, shape index: {}]   ;;  %s2832_s2 = inlined_call_operand.vmem [shape: bf16[128,64], index: 2, kind: input, shape index: {}]   ;;  %s2833_s3 = inlined_call_operand.vmem [shape: f32[128,1], index: 3, kind: input, shape index: {}]   ;;  %s2834_s4 = inlined_call_operand.vmem [shape: bf16[256,128], index: 4, kind: input, shape index: {}]   ;;  %s2835_s5 = inlined_call_operand.vmem [shape: f32[256,1], index: 5, kind: input, shape index: {}]   ;;  %s2836_s6 = inlined_call_operand.vmem [shape: bf16[128,256], index: 6, kind: input, shape index: {}]   ;;  %s2837_s7 = inlined_call_operand.vmem [shape: f32[128,1], index: 7, kind: input, shape index: {}]   ;;  %s2838_s8 = inlined_call_operand.vmem [shape: bf16[64,128], index: 8, kind: input, shape index: {}]   ;;  %s2839_s9 = inlined_call_operand.vmem [shape: f32[64,1], index: 9, kind: input, shape index: {}]   ;;  %s2840_s10 = inlined_call_operand.vmem [shape: bf16[1,64], index: 10, kind: input, shape index: {}]   ;;  %s2841_s11 = inlined_call_operand.<no memory space> [shape: f32[1,1], index: 11, kind: input, shape index: {}]   ;;  %s2842_s12 = inlined_call_operand.vmem [shape: f32[1,512], index: 12, kind: output, shape index: {}]  }
   0x1   :  { %v17_v0 = vstv %s2841_s11 }
   0x2   :  { %18 = vst [vmem:[#allocation2] sm:$0x1] %v17_v0 }
   0x3 LB: > { %s2176_s24 = sadd.s32 4294967295, %s2326_s23   ;;  %p2180_p0 = scmp.ge.s32.totalorder %s2326_s23, 1  ;;  %s2326_s23 = sphi %s2398_s23, %s24_s23  }
   0x4   : > { %p365_p1 = scmp.lt.s32.totalorder %s2326_s23, 3 }
   0x6   : > { %p366_p2 = pnand %p2180_p0, %p365_p1 }
   0x7   : > { %s2181_s25 = sshll.u32 (!%p366_p2), %s2176_s24, 1  ;;  %v2328_v1 = vmov (!%p366_p2), 0   ;;  %vm465_vm0 = vcmask (!%p366_p2), 1043456   ;;  %vm452_vm1 = vcmask (!%p366_p2), 64512   ;;  %v2264_v5 = vld [vmem:[%s2831_s1] sm:$0xff] (!%p366_p2)   ;;  %v2265_v7 = vld [vmem:[%s2831_s1 + $0x8] sm:$0xff] (!%p366_p2)  }
   0x8   : > { %369 = sbr.rel (%p366_p2) target bundleno = 1652 (0x674), region = 68  ;;  %p407_p3 = scmp.lt.s32.totalorder (!%p366_p2), %s2181_s25, 3  ;;  %504 = vmatprep.mubr.bf16.mxu0 (!%p366_p2), %v2328_v1  ;;  %2260 = vset.pattern.permute.xlu0 (!%p366_p2), %v2328_v1  ;;  %v2266_v8 = vld [vmem:[%s2831_s1 + $0x10] sm:$0xff] (!%p366_p2)   ;;  %v2267_v9 = vld [vmem:[%s2831_s1 + $0x18] sm:$0xff] (!%p366_p2)   ;;  %v585_v10 = vld [vmem:[%s2833_s3] sm:$0xff] (!%p366_p2)  ;;  %vm721_vm2 = vcmask (!%p366_p2), 523264  }
   0x9   : > { %2261 = vset.pattern.permute.xlu1 (!%p366_p2), %v2328_v1  ;;  %778 = vmatprep.mubr.bf16.mxu1 (!%p366_p2), %v2328_v1  ;;  %v586_v11 = vld [vmem:[%s2833_s3 + $0x8] sm:$0xff] (!%p366_p2)  ;;  %v587_v12 = vld [vmem:[%s2833_s3 + $0x10] sm:$0xff] (!%p366_p2)  ;;  %v589_v13 = vld [vmem:[%s2833_s3 + $0x20] sm:$0xff] (!%p366_p2) }
   0xa   : > { %603 = vperm.xlu0 (!%p366_p2), %2260, %v585_v10   ;;  %613 = vperm.xlu1 (!%p366_p2), %2261, %v587_v12   ;;  %v588_v14 = vld [vmem:[%s2833_s3 + $0x18] sm:$0xff] (!%p366_p2)  ;;  %v591_v15 = vld [vmem:[%s2833_s3 + $0x30] sm:$0xff] (!%p366_p2)  ;;  %v590_v16 = vld [vmem:[%s2833_s3 + $0x28] sm:$0xff] (!%p366_p2) }
   0xb   : > { %v593_v17 = vld [vmem:[%s2833_s3 + $0x40] sm:$0xff] (!%p366_p2)  ;;  %v592_v18 = vld [vmem:[%s2833_s3 + $0x38] sm:$0xff] (!%p366_p2)  ;;  %v595_v19 = vld [vmem:[%s2833_s3 + $0x50] sm:$0xff] (!%p366_p2) }
   0xc   : > { %v594_v20 = vld [vmem:[%s2833_s3 + $0x48] sm:$0xff] (!%p366_p2)  ;;  %v597_v21 = vld [vmem:[%s2833_s3 + $0x60] sm:$0xff] (!%p366_p2)  ;;  %v596_v22 = vld [vmem:[%s2833_s3 + $0x58] sm:$0xff] (!%p366_p2) }
   0xd   : > { %v599_v23 = vld [vmem:[%s2833_s3 + $0x70] sm:$0xff] (!%p366_p2)  ;;  %v598_v24 = vld [vmem:[%s2833_s3 + $0x68] sm:$0xff] (!%p366_p2)  ;;  %v939_v25 = vld [vmem:[%s2835_s5] sm:$0xff] (!%p366_p2) }
   0xe   : > { %608 = vperm.xlu0 (!%p366_p2), %2260, %v586_v11   ;;  %618 = vperm.xlu1 (!%p366_p2), %2261, %v588_v14   ;;  %v600_v26 = vld [vmem:[%s2833_s3 + $0x78] sm:$0xff] (!%p366_p2)  ;;  %v941_v27 = vld [vmem:[%s2835_s5 + $0x10] sm:$0xff] (!%p366_p2)  ;;  %v940_v28 = vld [vmem:[%s2835_s5 + $0x8] sm:$0xff] (!%p366_p2) }
   0xf   : > { %s2844_s25 = smov (!%p407_p3, %s2181_s25), 3  ;;  %v943_v29 = vld [vmem:[%s2835_s5 + $0x20] sm:$0xff]  ;;  %v942_v30 = vld [vmem:[%s2835_s5 + $0x18] sm:$0xff]  ;;  %v945_v31 = vld [vmem:[%s2835_s5 + $0x30] sm:$0xff] }
  0x10   : > { %s2182_s11 = sshll.u32 %s2844_s25, 2  ;;  %v944_v32 = vld [vmem:[%s2835_s5 + $0x28] sm:$0xff]  ;;  %v947_v33 = vld [vmem:[%s2835_s5 + $0x40] sm:$0xff]  ;;  %v946_v34 = vld [vmem:[%s2835_s5 + $0x38] sm:$0xff]  ;;  %s415_s17 = scalar_lea.vmem %s2842_s12, %s2844_s25 }
  0x11   : > { %s410_s28 = scalar_lea.vmem %s2830_s0, %s2182_s11  ;;  %v949_v35 = vld [vmem:[%s2835_s5 + $0x50] sm:$0xff]  ;;  %v948_v36 = vld [vmem:[%s2835_s5 + $0x48] sm:$0xff]  ;;  %v951_v37 = vld [vmem:[%s2835_s5 + $0x60] sm:$0xff] }
  0x12   : > { %v418_v2 = vld [vmem:[%s410_s28] sm:$0xff]  ;;  %623 = vperm.xlu0 %2260, %v589_v13   ;;  %628 = vperm.xlu1 %2261, %v590_v16   ;;  %v950_v38 = vld [vmem:[%s2835_s5 + $0x58] sm:$0xff]  ;;  %v953_v39 = vld [vmem:[%s2835_s5 + $0x70] sm:$0xff] }
  0x13   : > { %v2189_v3 = vcombine.high %v418_v2, %v418_v2  ;;  %v2188_v4 = vcombine.low %v418_v2, %v418_v2  ;;  %v952_v40 = vld [vmem:[%s2835_s5 + $0x68] sm:$0xff]  ;;  %v955_v41 = vld [vmem:[%s2835_s5 + $0x80] sm:$0xff]  ;;  %v954_v42 = vld [vmem:[%s2835_s5 + $0x78] sm:$0xff] }
  0x14   : > { %v957_v43 = vld [vmem:[%s2835_s5 + $0x90] sm:$0xff]  ;;  %v956_v44 = vld [vmem:[%s2835_s5 + $0x88] sm:$0xff]  ;;  %v959_v45 = vld [vmem:[%s2835_s5 + $0xa0] sm:$0xff] }
  0x15   : > { %2190 = vmatprep.subr.msk.bf16.mxu0 %vm465_vm0, %v2189_v3  ;;  %v467_v6 = vsel %vm465_vm0, %v2188_v4, 0  ;;  %v958_v46 = vld [vmem:[%s2835_s5 + $0x98] sm:$0xff]  ;;  %v961_v47 = vld [vmem:[%s2835_s5 + $0xb0] sm:$0xff]  ;;  %v960_v48 = vld [vmem:[%s2835_s5 + $0xa8] sm:$0xff] }
  0x16   : > { %473 = vmatpush1.bf16.msra.mxu0 %v467_v6  ;;  %633 = vperm.xlu0 %2260, %v591_v15   ;;  %v963_v49 = vld [vmem:[%s2835_s5 + $0xc0] sm:$0xff]  ;;  %v962_v50 = vld [vmem:[%s2835_s5 + $0xb8] sm:$0xff]  ;;  %v965_v51 = vld [vmem:[%s2835_s5 + $0xd0] sm:$0xff] }
  0x17   : > { %638 = vperm.xlu1 %2261, %v592_v18   ;;  %v964_v52 = vld [vmem:[%s2835_s5 + $0xc8] sm:$0xff]  ;;  %v967_v53 = vld [vmem:[%s2835_s5 + $0xe0] sm:$0xff]  ;;  %v966_v54 = vld [vmem:[%s2835_s5 + $0xd8] sm:$0xff] }
  0x18   : > { %v969_v55 = vld [vmem:[%s2835_s5 + $0xf0] sm:$0xff]  ;;  %v968_v56 = vld [vmem:[%s2835_s5 + $0xe8] sm:$0xff]  ;;  %v1532_v57 = vld [vmem:[%s2837_s7] sm:$0xff] }
  0x19   : > { %2191 = vmatmul.mubr.msk.bf16.vlgmr.msra.gmra.mrb[0].mxu0 %vm452_vm1, %v2264_v5  ;;  %v970_v58 = vld [vmem:[%s2835_s5 + $0xf8] sm:$0xff]  ;;  %v1534_v59 = vld [vmem:[%s2837_s7 + $0x10] sm:$0xff]  ;;  %v1533_v60 = vld [vmem:[%s2837_s7 + $0x8] sm:$0xff] }
  0x1a   : > { %514 = vmatprep.mubr.bf16.mxu0 %v2328_v1  ;;  %643 = vperm.xlu0 %2260, %v593_v17   ;;  %v1536_v61 = vld [vmem:[%s2837_s7 + $0x20] sm:$0xff]  ;;  %v1535_v62 = vld [vmem:[%s2837_s7 + $0x18] sm:$0xff]  ;;  %v1538_v63 = vld [vmem:[%s2837_s7 + $0x30] sm:$0xff] }
  0x1b   : > { %648 = vperm.xlu1 %2261, %v594_v20   ;;  %v1537_v0 = vld [vmem:[%s2837_s7 + $0x28] sm:$0xff]  ;;  %v1540_v2 = vld [vmem:[%s2837_s7 + $0x40] sm:$0xff]  ;;  %v1539_v3 = vld [vmem:[%s2837_s7 + $0x38] sm:$0xff] }
  0x1c   : > { %v1542_v4 = vld [vmem:[%s2837_s7 + $0x50] sm:$0xff]  ;;  %v1541_v5 = vld [vmem:[%s2837_s7 + $0x48] sm:$0xff]  ;;  %v1544_v6 = vld [vmem:[%s2837_s7 + $0x60] sm:$0xff] }
  0x1d   : > { %v1545_v10 = vld [vmem:[%s2837_s7 + $0x68] sm:$0xff]  ;;  %v1877_v11 = vld [vmem:[%s2839_s9] sm:$0xff]  ;;  %v1879_v20 = vld [vmem:[%s2839_s9 + $0x10] sm:$0xff] }
  0x1e   : > { %653 = vperm.xlu0 %2260, %v595_v19   ;;  %v1547_v19 = vld [vmem:[%s2837_s7 + $0x78] sm:$0xff] }
  0x1f   : > { %658 = vperm.xlu1 %2261, %v596_v22  }
  0x21   : > { %2192 = vmatmul.mubr.msk.bf16.gmra.mrb[4].mxu0 %vm452_vm1, %v2265_v7  ;;  %v1543_v7 = vld [vmem:[%s2837_s7 + $0x58] sm:$0xff] }
  0x22   : > { %524 = vmatprep.mubr.bf16.mxu0 %v2328_v1  ;;  %663 = vperm.xlu0 %2260, %v597_v21  }
  0x23   : > { %668 = vperm.xlu1 %2261, %v598_v24   ;;  %v1878_v24 = vld [vmem:[%s2839_s9 + $0x8] sm:$0xff] }
  0x26   : > { %673 = vperm.xlu0 %2260, %v599_v23  }
  0x27   : > { %678 = vperm.xlu1 %2261, %v600_v26  }
  0x29   : > { %2193 = vmatmul.mubr.msk.bf16.gmra.mrb[8].mxu0 %vm452_vm1, %v2266_v8  ;;  %v1546_v8 = vld [vmem:[%s2837_s7 + $0x70] sm:$0xff] }
  0x2a   : > { %534 = vmatprep.mubr.bf16.mxu0 %v2328_v1  ;;  %973 = vperm.xlu0 %2260, %v939_v25   ;;  %v1881_v25 = vld [vmem:[%s2839_s9 + $0x20] sm:$0xff] }
  0x2b   : > { %978 = vperm.xlu1 %2261, %v940_v28  }
  0x2e   : > { %983 = vperm.xlu0 %2260, %v941_v27  }
  0x2f   : > { %988 = vperm.xlu1 %2261, %v942_v30  }
  0x31   : > { %2194 = vmatmul.mubr.msk.bf16.gmra.mrb[12].mxu0 %vm452_vm1, %v2267_v9 }
  0x32   : > { %1259 = vmatprep.mubr.bf16.mxu0 %v2328_v1  ;;  %993 = vperm.xlu0 %2260, %v943_v29  }
  0x33   : > { %998 = vperm.xlu1 %2261, %v944_v32  }
  0x36   : > { %1003 = vperm.xlu0 %2260, %v945_v31  }
  0x37   : > { %1008 = vperm.xlu1 %2261, %v946_v34   ;;  %v1883_v34 = vld [vmem:[%s2839_s9 + $0x30] sm:$0xff] }
  0x3a   : > { %1013 = vperm.xlu0 %2260, %v947_v33   ;;  %v1880_v33 = vld [vmem:[%s2839_s9 + $0x18] sm:$0xff] }
  0x3b   : > { %1018 = vperm.xlu1 %2261, %v948_v36  }
  0x3e   : > { %1023 = vperm.xlu0 %2260, %v949_v35  }
  0x3f   : > { %1028 = vperm.xlu1 %2261, %v950_v38   ;;  %v1882_v38 = vld [vmem:[%s2839_s9 + $0x28] sm:$0xff] }
  0x42   : > { %1033 = vperm.xlu0 %2260, %v951_v37  }
  0x43   : > { %1038 = vperm.xlu1 %2261, %v952_v40  }
  0x46   : > { %1043 = vperm.xlu0 %2260, %v953_v39   ;;  %v2047_v39 = vld [vmem:[#allocation2] sm:$0x1] }
  0x47   : > { %1048 = vperm.xlu1 %2261, %v954_v42  }
  0x4a   : > { %1053 = vperm.xlu0 %2260, %v955_v41  }
  0x4b   : > { %1058 = vperm.xlu1 %2261, %v956_v44  }
  0x4e   : > { %1063 = vperm.xlu0 %2260, %v957_v43  }
  0x4f   : > { %1068 = vperm.xlu1 %2261, %v958_v46  }
  0x52   : > { %1073 = vperm.xlu0 %2260, %v959_v45  }
  0x53   : > { %1078 = vperm.xlu1 %2261, %v960_v48  }
  0x56   : > { %1083 = vperm.xlu0 %2260, %v961_v47   ;;  %v1884_v47 = vld [vmem:[%s2839_s9 + $0x38] sm:$0xff] }
  0x57   : > { %1088 = vperm.xlu1 %2261, %v962_v50  }
  0x5a   : > { %1093 = vperm.xlu0 %2260, %v963_v49  }
  0x5b   : > { %1098 = vperm.xlu1 %2261, %v964_v52  }
  0x5e   : > { %1103 = vperm.xlu0 %2260, %v965_v51  }
  0x5f   : > { %1108 = vperm.xlu1 %2261, %v966_v54  }
  0x62   : > { %1113 = vperm.xlu0 %2260, %v967_v53  }
  0x63   : > { %1118 = vperm.xlu1 %2261, %v968_v56  }
  0x66   : > { %1123 = vperm.xlu0 %2260, %v969_v55  }
  0x67   : > { %1128 = vperm.xlu1 %2261, %v970_v58  }
  0x6a   : > { %1550 = vperm.xlu0 %2260, %v1532_v57  }
  0x6b   : > { %1555 = vperm.xlu1 %2261, %v1533_v60   ;;  %v2268_v60 = vld [vmem:[%s2832_s2] sm:$0xff]  }
  0x6e   : > { %1560 = vperm.xlu0 %2260, %v1534_v59  }
  0x6f   : > { %1565 = vperm.xlu1 %2261, %v1535_v62   ;;  %v2270_v62 = vld [vmem:[%s2832_s2 + $0x10] sm:$0xff]  }
  0x72   : > { %1570 = vperm.xlu0 %2260, %v1536_v61   ;;  %v2269_v61 = vld [vmem:[%s2832_s2 + $0x8] sm:$0xff]  }
  0x73   : > { %1575 = vperm.xlu1 %2261, %v1537_v0   ;;  %v2272_v0 = vld [vmem:[%s2832_s2 + $0x20] sm:$0xff]  }
  0x76   : > { %1580 = vperm.xlu0 %2260, %v1538_v63   ;;  %v2271_v63 = vld [vmem:[%s2832_s2 + $0x18] sm:$0xff]  }
  0x77   : > { %1585 = vperm.xlu1 %2261, %v1539_v3   ;;  %v2274_v3 = vld [vmem:[%s2832_s2 + $0x30] sm:$0xff]  }
  0x7a   : > { %1590 = vperm.xlu0 %2260, %v1540_v2   ;;  %v2273_v2 = vld [vmem:[%s2832_s2 + $0x28] sm:$0xff]  }
  0x7b   : > { %1595 = vperm.xlu1 %2261, %v1541_v5  }
  0x7e   : > { %1600 = vperm.xlu0 %2260, %v1542_v4   ;;  %v2275_v4 = vld [vmem:[%s2832_s2 + $0x38] sm:$0xff]  }
  0x7f   : > { %1605 = vperm.xlu1 %2261, %v1543_v7  }
  0x82   : > { %1610 = vperm.xlu0 %2260, %v1544_v6  }
  0x83   : > { %1615 = vperm.xlu1 %2261, %v1545_v10  }
  0x86   : > { %1620 = vperm.xlu0 %2260, %v1546_v8  }
  0x87   : > { %1625 = vperm.xlu1 %2261, %v1547_v19  }
  0x89   : > { %v604_v5 = vpop.permute.xlu0 %603 }
  0x8a   : > { %1887 = vperm.xlu0 %2260, %v1877_v11  }
  0x8b   : > { %1892 = vperm.xlu1 %2261, %v1878_v24  }
  0x8e   : > { %1897 = vperm.xlu0 %2260, %v1879_v20  }
  0x8f   : > { %1902 = vperm.xlu1 %2261, %v1880_v33  }
  0x92   : > { %1907 = vperm.xlu0 %2260, %v1881_v25  }
  0x93   : > { %1912 = vperm.xlu1 %2261, %v1882_v38  }
  0x96   : > { %1917 = vperm.xlu0 %2260, %v1883_v34  }
  0x97   : > { %1922 = vperm.xlu1 %2261, %v1884_v47  }
  0x9a   : > { %2050 = vperm.xlu0 %2260, %v2047_v39  }
  0xec   : > { %v506_v9 = vpop.f32.mrb[0].mxu0 }
  0xed   : > { %v508_v12 = vpop.f32.mrb[1].mxu0  ;;  %v545_v14 = vmax.f32 %v506_v9, 0.0  ;;  %v609_v9 = vpop.permute.xlu0 %608 }
  0xee   : > { %v510_v13 = vpop.f32.mrb[2].mxu0  ;;  %v546_v17 = vmax.f32 %v508_v12, 0.0 }
  0xef   : > { %v547_v15 = vmax.f32 %v510_v13, 0.0  ;;  %v512_v16 = vpop.f32.mrb[3].mxu0 }
  0xf0   : > { %v548_v18 = vmax.f32 %v512_v16, 0.0 }
  0xf1   : > { %v561_v21 = vpack.c.bf16 %v547_v15, %v545_v14  ;;  %v614_v14 = vpop.permute.xlu1 %613 }
  0xf2   : > { %v562_v22 = vpack.c.bf16 %v548_v18, %v546_v17 }
  0xf4   : > { %v516_v23 = vpop.f32.mrb[4].mxu0  ;;  %746 = vmatprep.subr.bf16.mxu1 %v562_v22 }
  0xf5   : > { %v518_v26 = vpop.f32.mrb[5].mxu0  ;;  %747 = vmatpush1.bf16.msra.mxu1 %v561_v21  ;;  %v549_v28 = vmax.f32 %v516_v23, 0.0  ;;  %v619_v25 = vpop.permute.xlu1 %618 }
  0xf6   : > { %v520_v27 = vpop.f32.mrb[6].mxu0  ;;  %v550_v31 = vmax.f32 %v518_v26, 0.0 }
  0xf7   : > { %v551_v29 = vmax.f32 %v520_v27, 0.0  ;;  %v522_v30 = vpop.f32.mrb[7].mxu0 }
  0xf8   : > { %v552_v32 = vmax.f32 %v522_v30, 0.0 }
  0xf9   : > { %v563_v35 = vpack.c.bf16 %v551_v29, %v549_v28 }
  0xfa   : > { %v564_v36 = vpack.c.bf16 %v552_v32, %v550_v31 }
  0xfc   : > { %v526_v37 = vpop.f32.mrb[8].mxu0  ;;  %748 = vmatprep.subr.bf16.mxu1 %v564_v36  ;;  %v624_v36 = vpop.permute.xlu0 %623 }
  0xfd   : > { %v528_v40 = vpop.f32.mrb[9].mxu0  ;;  %749 = vmatpush1.bf16.msra.mxu1 %v563_v35  ;;  %v553_v42 = vmax.f32 %v526_v37, 0.0 }
  0xfe   : > { %v530_v41 = vpop.f32.mrb[10].mxu0  ;;  %v554_v45 = vmax.f32 %v528_v40, 0.0 }
  0xff   : > { %v555_v43 = vmax.f32 %v530_v41, 0.0  ;;  %v532_v44 = vpop.f32.mrb[11].mxu0  ;;  %v629_v41 = vpop.permute.xlu1 %628 }
 0x100   : > { %v556_v46 = vmax.f32 %v532_v44, 0.0 }
 0x101   : > { %v565_v48 = vpack.c.bf16 %v555_v43, %v553_v42 }
 0x102   : > { %v566_v49 = vpack.c.bf16 %v556_v46, %v554_v45 }
 0x104   : > { %v536_v50 = vpop.f32.mrb[12].mxu0  ;;  %750 = vmatprep.subr.bf16.mxu1 %v566_v49 }
 0x105   : > { %v538_v51 = vpop.f32.mrb[13].mxu0  ;;  %751 = vmatpush1.bf16.msra.mxu1 %v565_v48  ;;  %v557_v53 = vmax.f32 %v536_v50, 0.0 }
 0x106   : > { %v540_v52 = vpop.f32.mrb[14].mxu0  ;;  %v558_v56 = vmax.f32 %v538_v51, 0.0 }
 0x107   : > { %v559_v54 = vmax.f32 %v540_v52, 0.0  ;;  %v542_v55 = vpop.f32.mrb[15].mxu0  ;;  %v634_v52 = vpop.permute.xlu0 %633 }
 0x108   : > { %v560_v57 = vmax.f32 %v542_v55, 0.0 }
 0x109   : > { %v567_v58 = vpack.c.bf16 %v559_v54, %v557_v53 }
 0x10a   : > { %v568_v59 = vpack.c.bf16 %v560_v57, %v558_v56  ;;  %v639_v57 = vpop.permute.xlu1 %638 }
 0x10c   : > { %752 = vmatprep.subr.bf16.mxu1 %v568_v59 }
 0x10d   : > { %753 = vmatpush1.bf16.msra.mxu1 %v567_v58 }
 0x110   : > { %2203 = vmatmul.mubr.msk.bf16.vlgmr.msra.gmra.mrb[0].mxu1 %vm721_vm2, %v2268_v60 }
 0x111   : > { %788 = vmatprep.mubr.bf16.mxu1 %v2328_v1 }
 0x118   : > { %2204 = vmatmul.mubr.msk.bf16.gmra.mrb[4].mxu1 %vm721_vm2, %v2269_v61 }
 0x119   : > { %798 = vmatprep.mubr.bf16.mxu1 %v2328_v1 }
 0x120   : > { %2205 = vmatmul.mubr.msk.bf16.gmra.mrb[8].mxu1 %vm721_vm2, %v2270_v62 }
 0x121   : > { %808 = vmatprep.mubr.bf16.mxu1 %v2328_v1 }
 0x128   : > { %2206 = vmatmul.mubr.msk.bf16.gmra.mrb[12].mxu1 %vm721_vm2, %v2271_v63 }
 0x129   : > { %818 = vmatprep.mubr.bf16.mxu1 %v2328_v1 }
 0x130   : > { %2207 = vmatmul.mubr.msk.bf16.gmra.mrb[16].mxu1 %vm721_vm2, %v2272_v0 }
 0x131   : > { %828 = vmatprep.mubr.bf16.mxu1 %v2328_v1 }
 0x138   : > { %2208 = vmatmul.mubr.msk.bf16.gmra.mrb[20].mxu1 %vm721_vm2, %v2273_v2 }
 0x139   : > { %838 = vmatprep.mubr.bf16.mxu1 %v2328_v1 }
 0x140   : > { %2209 = vmatmul.mubr.msk.bf16.gmra.mrb[24].mxu1 %vm721_vm2, %v2274_v3 }
 0x141   : > { %848 = vmatprep.mubr.bf16.mxu1 %v2328_v1 }
 0x148   : > { %2210 = vmatmul.mubr.msk.bf16.gmra.mrb[28].mxu1 %vm721_vm2, %v2275_v4 }
 0x1e3   : > { %v780_v6 = vpop.f32.mrb[0].mxu1 }
 0x1e4   : > { %v781_v7 = vadd.f32 %v780_v6, %v604_v5  ;;  %v782_v8 = vpop.f32.mrb[1].mxu1 }
 0x1e5   : > { %v783_v10 = vadd.f32 %v782_v8, %v604_v5  ;;  %v784_v11 = vpop.f32.mrb[2].mxu1  ;;  %v644_v5 = vpop.permute.xlu0 %643 }
 0x1e6   : > { %v785_v12 = vadd.f32 %v784_v11, %v609_v9  ;;  %v786_v13 = vpop.f32.mrb[3].mxu1  ;;  %v859_v16 = vmax.f32 %v781_v7, 0.0 }
 0x1e7   : > { %v787_v15 = vadd.f32 %v786_v13, %v609_v9  ;;  %v860_v18 = vmax.f32 %v783_v10, 0.0  ;;  %v649_v10 = vpop.permute.xlu1 %648 }
 0x1e8   : > { %v861_v17 = vmax.f32 %v785_v12, 0.0 }
 0x1e9   : > { %v862_v19 = vmax.f32 %v787_v15, 0.0 }
 0x1ea   : > { %v891_v20 = vpack.c.bf16 %v861_v17, %v859_v16 }
 0x1eb   : > { %v892_v21 = vpack.c.bf16 %v862_v19, %v860_v18  ;;  %v790_v22 = vpop.f32.mrb[4].mxu1 }
 0x1ec   : > { %v791_v23 = vadd.f32 %v790_v22, %v614_v14  ;;  %v792_v24 = vpop.f32.mrb[5].mxu1 }
 0x1ed   : > { %v793_v26 = vadd.f32 %v792_v24, %v614_v14  ;;  %v794_v27 = vpop.f32.mrb[6].mxu1  ;;  %1227 = vmatprep.subr.bf16.mxu0 %v892_v21  ;;  %v654_v21 = vpop.permute.xlu0 %653 }
 0x1ee   : > { %v795_v28 = vadd.f32 %v794_v27, %v619_v25  ;;  %v796_v29 = vpop.f32.mrb[7].mxu1  ;;  %1228 = vmatpush1.bf16.msra.mxu0 %v891_v20  ;;  %v863_v31 = vmax.f32 %v791_v23, 0.0 }
 0x1ef   : > { %v797_v30 = vadd.f32 %v796_v29, %v619_v25  ;;  %v864_v33 = vmax.f32 %v793_v26, 0.0  ;;  %v659_v26 = vpop.permute.xlu1 %658 }
 0x1f0   : > { %v865_v32 = vmax.f32 %v795_v28, 0.0 }
 0x1f1   : > { %v866_v34 = vmax.f32 %v797_v30, 0.0 }
 0x1f2   : > { %v893_v35 = vpack.c.bf16 %v865_v32, %v863_v31 }
 0x1f3   : > { %v894_v37 = vpack.c.bf16 %v866_v34, %v864_v33  ;;  %v800_v38 = vpop.f32.mrb[8].mxu1 }
 0x1f4   : > { %v801_v39 = vadd.f32 %v800_v38, %v624_v36  ;;  %v802_v40 = vpop.f32.mrb[9].mxu1 }
 0x1f5   : > { %v803_v42 = vadd.f32 %v802_v40, %v624_v36  ;;  %v804_v43 = vpop.f32.mrb[10].mxu1  ;;  %1229 = vmatprep.subr.bf16.mxu0 %v894_v37  ;;  %v664_v37 = vpop.permute.xlu0 %663 }
 0x1f6   : > { %v805_v44 = vadd.f32 %v804_v43, %v629_v41  ;;  %v806_v45 = vpop.f32.mrb[11].mxu1  ;;  %1230 = vmatpush1.bf16.msra.mxu0 %v893_v35  ;;  %v867_v47 = vmax.f32 %v801_v39, 0.0 }
 0x1f7   : > { %v807_v46 = vadd.f32 %v806_v45, %v629_v41  ;;  %v868_v49 = vmax.f32 %v803_v42, 0.0  ;;  %v669_v42 = vpop.permute.xlu1 %668 }
 0x1f8   : > { %v869_v48 = vmax.f32 %v805_v44, 0.0 }
 0x1f9   : > { %v870_v50 = vmax.f32 %v807_v46, 0.0 }
 0x1fa   : > { %v895_v51 = vpack.c.bf16 %v869_v48, %v867_v47 }
 0x1fb   : > { %v896_v53 = vpack.c.bf16 %v870_v50, %v868_v49  ;;  %v810_v54 = vpop.f32.mrb[12].mxu1 }
 0x1fc   : > { %v811_v55 = vadd.f32 %v810_v54, %v634_v52  ;;  %v812_v56 = vpop.f32.mrb[13].mxu1 }
 0x1fd   : > { %v813_v58 = vadd.f32 %v812_v56, %v634_v52  ;;  %v814_v59 = vpop.f32.mrb[14].mxu1  ;;  %1231 = vmatprep.subr.bf16.mxu0 %v896_v53  ;;  %v674_v53 = vpop.permute.xlu0 %673 }
 0x1fe   : > { %v815_v60 = vadd.f32 %v814_v59, %v639_v57  ;;  %v816_v61 = vpop.f32.mrb[15].mxu1  ;;  %1232 = vmatpush1.bf16.msra.mxu0 %v895_v51  ;;  %v871_v63 = vmax.f32 %v811_v55, 0.0 }
 0x1ff   : > { %v817_v62 = vadd.f32 %v816_v61, %v639_v57  ;;  %v872_v2 = vmax.f32 %v813_v58, 0.0  ;;  %v679_v58 = vpop.permute.xlu1 %678 }
 0x200   : > { %v873_v0 = vmax.f32 %v815_v60, 0.0 }
 0x201   : > { %v874_v3 = vmax.f32 %v817_v62, 0.0 }
 0x202   : > { %v897_v4 = vpack.c.bf16 %v873_v0, %v871_v63 }
 0x203   : > { %v898_v6 = vpack.c.bf16 %v874_v3, %v872_v2  ;;  %v820_v7 = vpop.f32.mrb[16].mxu1 }
 0x204   : > { %v821_v8 = vadd.f32 %v820_v7, %v644_v5  ;;  %v822_v9 = vpop.f32.mrb[17].mxu1  ;;  %v2276_v7 = vld [vmem:[%s2834_s4] sm:$0xff]  }
 0x205   : > { %v823_v11 = vadd.f32 %v822_v9, %v644_v5  ;;  %v824_v12 = vpop.f32.mrb[18].mxu1  ;;  %1233 = vmatprep.subr.bf16.mxu0 %v898_v6  ;;  %v2278_v9 = vld [vmem:[%s2834_s4 + $0x10] sm:$0xff]  }
 0x206   : > { %v825_v13 = vadd.f32 %v824_v12, %v649_v10  ;;  %v826_v14 = vpop.f32.mrb[19].mxu1  ;;  %1234 = vmatpush1.bf16.msra.mxu0 %v897_v4  ;;  %v875_v16 = vmax.f32 %v821_v8, 0.0  ;;  %v2277_v8 = vld [vmem:[%s2834_s4 + $0x8] sm:$0xff]  }
 0x207   : > { %v827_v15 = vadd.f32 %v826_v14, %v649_v10  ;;  %v876_v18 = vmax.f32 %v823_v11, 0.0  ;;  %v2279_v10 = vld [vmem:[%s2834_s4 + $0x18] sm:$0xff]   ;;  %v2280_v11 = vld [vmem:[%s2834_s4 + $0x20] sm:$0xff]   ;;  %v2281_v12 = vld [vmem:[%s2834_s4 + $0x28] sm:$0xff]  }
 0x208   : > { %v877_v17 = vmax.f32 %v825_v13, 0.0  ;;  %v2282_v13 = vld [vmem:[%s2834_s4 + $0x30] sm:$0xff]   ;;  %v2283_v14 = vld [vmem:[%s2834_s4 + $0x38] sm:$0xff]  }
 0x209   : > { %v878_v19 = vmax.f32 %v827_v15, 0.0  ;;  %v2284_v15 = vld [vmem:[%s2834_s4 + $0x40] sm:$0xff]  }
 0x20a   : > { %v899_v20 = vpack.c.bf16 %v877_v17, %v875_v16  ;;  %v2285_v16 = vld [vmem:[%s2834_s4 + $0x48] sm:$0xff]   ;;  %v2286_v17 = vld [vmem:[%s2834_s4 + $0x50] sm:$0xff]  }
 0x20b   : > { %v900_v22 = vpack.c.bf16 %v878_v19, %v876_v18  ;;  %v830_v23 = vpop.f32.mrb[20].mxu1  ;;  %v2287_v18 = vld [vmem:[%s2834_s4 + $0x58] sm:$0xff]   ;;  %v2288_v19 = vld [vmem:[%s2834_s4 + $0x60] sm:$0xff]  }
 0x20c   : > { %v831_v24 = vadd.f32 %v830_v23, %v654_v21  ;;  %v832_v25 = vpop.f32.mrb[21].mxu1  ;;  %v974_v23 = vpop.permute.xlu0 %973 }
 0x20d   : > { %v833_v27 = vadd.f32 %v832_v25, %v654_v21  ;;  %v834_v28 = vpop.f32.mrb[22].mxu1  ;;  %1235 = vmatprep.subr.bf16.mxu0 %v900_v22  ;;  %v2290_v21 = vld [vmem:[%s2834_s4 + $0x70] sm:$0xff]   ;;  %v2291_v22 = vld [vmem:[%s2834_s4 + $0x78] sm:$0xff]  }
 0x20e   : > { %v835_v29 = vadd.f32 %v834_v28, %v659_v26  ;;  %v836_v30 = vpop.f32.mrb[23].mxu1  ;;  %1236 = vmatpush1.bf16.msra.mxu0 %v899_v20  ;;  %v879_v32 = vmax.f32 %v831_v24, 0.0  ;;  %v2289_v20 = vld [vmem:[%s2834_s4 + $0x68] sm:$0xff]  }
 0x20f   : > { %v837_v31 = vadd.f32 %v836_v30, %v659_v26  ;;  %v880_v34 = vmax.f32 %v833_v27, 0.0  ;;  %v979_v27 = vpop.permute.xlu1 %978 }
 0x210   : > { %v881_v33 = vmax.f32 %v835_v29, 0.0 }
 0x211   : > { %v882_v35 = vmax.f32 %v837_v31, 0.0 }
 0x212   : > { %v901_v36 = vpack.c.bf16 %v881_v33, %v879_v32  ;;  %v2294_v32 = vld [vmem:[%s2836_s6 + $0x4] ss:$8 sps:$4 sm:$0xff]  }
 0x213   : > { %v902_v38 = vpack.c.bf16 %v882_v35, %v880_v34  ;;  %v840_v39 = vpop.f32.mrb[24].mxu1  ;;  %1740 = vmatprep.mubr.bf16.mxu1 %v2294_v32 }
 0x214   : > { %v841_v40 = vadd.f32 %v840_v39, %v664_v37  ;;  %v842_v41 = vpop.f32.mrb[25].mxu1  ;;  %v984_v39 = vpop.permute.xlu0 %983 }
 0x215   : > { %v843_v43 = vadd.f32 %v842_v41, %v664_v37  ;;  %v844_v44 = vpop.f32.mrb[26].mxu1  ;;  %1237 = vmatprep.subr.bf16.mxu0 %v902_v38 }
 0x216   : > { %v845_v45 = vadd.f32 %v844_v44, %v669_v42  ;;  %v846_v46 = vpop.f32.mrb[27].mxu1  ;;  %1238 = vmatpush1.bf16.msra.mxu0 %v901_v36  ;;  %v883_v48 = vmax.f32 %v841_v40, 0.0  ;;  %v989_v44 = vpop.permute.xlu1 %988 }
 0x217   : > { %v847_v47 = vadd.f32 %v846_v46, %v669_v42  ;;  %v884_v50 = vmax.f32 %v843_v43, 0.0 }
 0x218   : > { %v885_v49 = vmax.f32 %v845_v45, 0.0 }
 0x219   : > { %v886_v51 = vmax.f32 %v847_v47, 0.0 }
 0x21a   : > { %v903_v52 = vpack.c.bf16 %v885_v49, %v883_v48 }
 0x21b   : > { %v904_v54 = vpack.c.bf16 %v886_v51, %v884_v50  ;;  %v850_v55 = vpop.f32.mrb[28].mxu1 }
 0x21c   : > { %v851_v56 = vadd.f32 %v850_v55, %v674_v53  ;;  %v852_v57 = vpop.f32.mrb[29].mxu1  ;;  %v994_v55 = vpop.permute.xlu0 %993 }
 0x21d   : > { %v853_v59 = vadd.f32 %v852_v57, %v674_v53  ;;  %v854_v60 = vpop.f32.mrb[30].mxu1  ;;  %1239 = vmatprep.subr.bf16.mxu0 %v904_v54 }
 0x21e   : > { %v855_v61 = vadd.f32 %v854_v60, %v679_v58  ;;  %v856_v62 = vpop.f32.mrb[31].mxu1  ;;  %1240 = vmatpush1.bf16.msra.mxu0 %v903_v52  ;;  %v887_v0 = vmax.f32 %v851_v56, 0.0  ;;  %v999_v60 = vpop.permute.xlu1 %998 }
 0x21f   : > { %v857_v63 = vadd.f32 %v856_v62, %v679_v58  ;;  %v888_v3 = vmax.f32 %v853_v59, 0.0 }
 0x220   : > { %v889_v2 = vmax.f32 %v855_v61, 0.0 }
 0x221   : > { %v890_v4 = vmax.f32 %v857_v63, 0.0 }
 0x222   : > { %v905_v5 = vpack.c.bf16 %v889_v2, %v887_v0 }
 0x223   : > { %v906_v6 = vpack.c.bf16 %v890_v4, %v888_v3 }
 0x225   : > { %1241 = vmatprep.subr.bf16.mxu0 %v906_v6 }
 0x226   : > { %1242 = vmatpush1.bf16.msra.mxu0 %v905_v5 }
 0x229   : > { %1260 = vmatmul.mubr.bf16.vlgmr.msra.gmra.mrb[16].mxu0 %v2276_v7 }
 0x22a   : > { %1269 = vmatprep.mubr.bf16.mxu0 %v2328_v1 }
 0x231   : > { %1270 = vmatmul.mubr.bf16.gmra.mrb[20].mxu0 %v2277_v8  ;;  %v1004_v8 = vpop.permute.xlu0 %1003 }
 0x232   : > { %1279 = vmatprep.mubr.bf16.mxu0 %v2328_v1 }
 0x239   : > { %1280 = vmatmul.mubr.bf16.gmra.mrb[24].mxu0 %v2278_v9 }
 0x23a   : > { %1289 = vmatprep.mubr.bf16.mxu0 %v2328_v1 }
 0x241   : > { %1290 = vmatmul.mubr.bf16.gmra.mrb[28].mxu0 %v2279_v10 }
 0x242   : > { %1299 = vmatprep.mubr.bf16.mxu0 %v2328_v1 }
 0x249   : > { %1300 = vmatmul.mubr.bf16.gmra.mrb[32].mxu0 %v2280_v11 }
 0x24a   : > { %1309 = vmatprep.mubr.bf16.mxu0 %v2328_v1 }
 0x251   : > { %1310 = vmatmul.mubr.bf16.gmra.mrb[36].mxu0 %v2281_v12 }
 0x252   : > { %1319 = vmatprep.mubr.bf16.mxu0 %v2328_v1 }
 0x259   : > { %1320 = vmatmul.mubr.bf16.gmra.mrb[40].mxu0 %v2282_v13  ;;  %v1009_v13 = vpop.permute.xlu1 %1008 }
 0x25a   : > { %1329 = vmatprep.mubr.bf16.mxu0 %v2328_v1 }
 0x261   : > { %1330 = vmatmul.mubr.bf16.gmra.mrb[44].mxu0 %v2283_v14 }
 0x262   : > { %1339 = vmatprep.mubr.bf16.mxu0 %v2328_v1 }
 0x269   : > { %1340 = vmatmul.mubr.bf16.gmra.mrb[48].mxu0 %v2284_v15 }
 0x26a   : > { %1349 = vmatprep.mubr.bf16.mxu0 %v2328_v1 }
 0x271   : > { %1350 = vmatmul.mubr.bf16.gmra.mrb[52].mxu0 %v2285_v16 }
 0x272   : > { %1359 = vmatprep.mubr.bf16.mxu0 %v2328_v1 }
 0x279   : > { %1360 = vmatmul.mubr.bf16.gmra.mrb[56].mxu0 %v2286_v17 }
 0x27a   : > { %1369 = vmatprep.mubr.bf16.mxu0 %v2328_v1 }
 0x281   : > { %1370 = vmatmul.mubr.bf16.gmra.mrb[60].mxu0 %v2287_v18 }
 0x282   : > { %1379 = vmatprep.mubr.bf16.mxu0 %v2328_v1 }
 0x289   : > { %1380 = vmatmul.mubr.bf16.gmra.mrb[64].mxu0 %v2288_v19 }
 0x28a   : > { %1389 = vmatprep.mubr.bf16.mxu0 %v2328_v1 }
 0x291   : > { %1390 = vmatmul.mubr.bf16.gmra.mrb[68].mxu0 %v2289_v20 }
 0x292   : > { %1399 = vmatprep.mubr.bf16.mxu0 %v2328_v1 }
 0x299   : > { %1400 = vmatmul.mubr.bf16.gmra.mrb[72].mxu0 %v2290_v21 }
 0x29a   : > { %1409 = vmatprep.mubr.bf16.mxu0 %v2328_v1 }
 0x2a1   : > { %1410 = vmatmul.mubr.bf16.gmra.mrb[76].mxu0 %v2291_v22 }
 0x2a2   : > { %2092 = vmatprep.mubr.bf16.mxu0 %v2328_v1 }
 0x2fc   : > { %v1261_v24 = vpop.f32.mrb[16].mxu0 }
 0x2fd   : > { %v1262_v25 = vadd.f32 %v1261_v24, %v974_v23  ;;  %v1263_v26 = vpop.f32.mrb[17].mxu0  ;;  %v1014_v24 = vpop.permute.xlu0 %1013 }
 0x2fe   : > { %v1264_v28 = vadd.f32 %v1263_v26, %v974_v23  ;;  %v1265_v29 = vpop.f32.mrb[18].mxu0 }
 0x2ff   : > { %v1266_v30 = vadd.f32 %v1265_v29, %v979_v27  ;;  %v1267_v31 = vpop.f32.mrb[19].mxu0  ;;  %v1420_v34 = vmax.f32 %v1262_v25, 0.0  ;;  %v1019_v29 = vpop.permute.xlu1 %1018 }
 0x300   : > { %v1268_v33 = vadd.f32 %v1267_v31, %v979_v27  ;;  %v1421_v36 = vmax.f32 %v1264_v28, 0.0 }
 0x301   : > { %v1422_v35 = vmax.f32 %v1266_v30, 0.0 }
 0x302   : > { %v1423_v37 = vmax.f32 %v1268_v33, 0.0 }
 0x303   : > { %v1484_v38 = vpack.c.bf16 %v1422_v35, %v1420_v34 }
 0x304   : > { %v1485_v40 = vpack.c.bf16 %v1423_v37, %v1421_v36  ;;  %v1271_v41 = vpop.f32.mrb[20].mxu0 }
 0x305   : > { %v1272_v42 = vadd.f32 %v1271_v41, %v984_v39  ;;  %v1273_v43 = vpop.f32.mrb[21].mxu0 }
 0x306   : > { %v1274_v45 = vadd.f32 %v1273_v43, %v984_v39  ;;  %v1275_v46 = vpop.f32.mrb[22].mxu0  ;;  %1708 = vmatprep.subr.bf16.mxu1 %v1485_v40  ;;  %v1024_v40 = vpop.permute.xlu0 %1023 }
 0x307   : > { %v1276_v47 = vadd.f32 %v1275_v46, %v989_v44  ;;  %v1277_v48 = vpop.f32.mrb[23].mxu0  ;;  %1709 = vmatpush1.bf16.msra.mxu1 %v1484_v38  ;;  %v1424_v50 = vmax.f32 %v1272_v42, 0.0 }
 0x308   : > { %v1278_v49 = vadd.f32 %v1277_v48, %v989_v44  ;;  %v1425_v52 = vmax.f32 %v1274_v45, 0.0  ;;  %v1029_v45 = vpop.permute.xlu1 %1028 }
 0x309   : > { %v1426_v51 = vmax.f32 %v1276_v47, 0.0 }
 0x30a   : > { %v1427_v53 = vmax.f32 %v1278_v49, 0.0 }
 0x30b   : > { %v1486_v54 = vpack.c.bf16 %v1426_v51, %v1424_v50 }
 0x30c   : > { %v1487_v56 = vpack.c.bf16 %v1427_v53, %v1425_v52  ;;  %v1281_v57 = vpop.f32.mrb[24].mxu0 }
 0x30d   : > { %v1282_v58 = vadd.f32 %v1281_v57, %v994_v55  ;;  %v1283_v59 = vpop.f32.mrb[25].mxu0 }
 0x30e   : > { %v1284_v61 = vadd.f32 %v1283_v59, %v994_v55  ;;  %v1285_v62 = vpop.f32.mrb[26].mxu0  ;;  %1710 = vmatprep.subr.bf16.mxu1 %v1487_v56  ;;  %v1034_v56 = vpop.permute.xlu0 %1033 }
 0x30f   : > { %v1286_v63 = vadd.f32 %v1285_v62, %v999_v60  ;;  %v1287_v0 = vpop.f32.mrb[27].mxu0  ;;  %1711 = vmatpush1.bf16.msra.mxu1 %v1486_v54  ;;  %v1428_v3 = vmax.f32 %v1282_v58, 0.0 }
 0x310   : > { %v1288_v2 = vadd.f32 %v1287_v0, %v999_v60  ;;  %v1429_v5 = vmax.f32 %v1284_v61, 0.0  ;;  %v1039_v61 = vpop.permute.xlu1 %1038 }
 0x311   : > { %v1430_v4 = vmax.f32 %v1286_v63, 0.0 }
 0x312   : > { %v1431_v6 = vmax.f32 %v1288_v2, 0.0 }
 0x313   : > { %v1488_v7 = vpack.c.bf16 %v1430_v4, %v1428_v3 }
 0x314   : > { %v1489_v9 = vpack.c.bf16 %v1431_v6, %v1429_v5  ;;  %v1291_v10 = vpop.f32.mrb[28].mxu0 }
 0x315   : > { %v1292_v11 = vadd.f32 %v1291_v10, %v1004_v8  ;;  %v1293_v12 = vpop.f32.mrb[29].mxu0 }
 0x316   : > { %v1294_v14 = vadd.f32 %v1293_v12, %v1004_v8  ;;  %v1295_v15 = vpop.f32.mrb[30].mxu0  ;;  %1712 = vmatprep.subr.bf16.mxu1 %v1489_v9  ;;  %v1044_v9 = vpop.permute.xlu0 %1043 }
 0x317   : > { %v1296_v16 = vadd.f32 %v1295_v15, %v1009_v13  ;;  %v1297_v17 = vpop.f32.mrb[31].mxu0  ;;  %1713 = vmatpush1.bf16.msra.mxu1 %v1488_v7  ;;  %v1432_v19 = vmax.f32 %v1292_v11, 0.0 }
 0x318   : > { %v1298_v18 = vadd.f32 %v1297_v17, %v1009_v13  ;;  %v1433_v21 = vmax.f32 %v1294_v14, 0.0  ;;  %v1049_v14 = vpop.permute.xlu1 %1048 }
 0x319   : > { %v1434_v20 = vmax.f32 %v1296_v16, 0.0 }
 0x31a   : > { %v1435_v22 = vmax.f32 %v1298_v18, 0.0 }
 0x31b   : > { %v1490_v23 = vpack.c.bf16 %v1434_v20, %v1432_v19 }
 0x31c   : > { %v1491_v25 = vpack.c.bf16 %v1435_v22, %v1433_v21  ;;  %v1301_v26 = vpop.f32.mrb[32].mxu0 }
 0x31d   : > { %v1302_v27 = vadd.f32 %v1301_v26, %v1014_v24  ;;  %v1303_v28 = vpop.f32.mrb[33].mxu0 }
 0x31e   : > { %v1304_v30 = vadd.f32 %v1303_v28, %v1014_v24  ;;  %v1305_v31 = vpop.f32.mrb[34].mxu0  ;;  %1714 = vmatprep.subr.bf16.mxu1 %v1491_v25  ;;  %v1054_v25 = vpop.permute.xlu0 %1053 }
 0x31f   : > { %v1306_v32 = vadd.f32 %v1305_v31, %v1019_v29  ;;  %v1307_v33 = vpop.f32.mrb[35].mxu0  ;;  %1715 = vmatpush1.bf16.msra.mxu1 %v1490_v23  ;;  %v1436_v35 = vmax.f32 %v1302_v27, 0.0 }
 0x320   : > { %v1308_v34 = vadd.f32 %v1307_v33, %v1019_v29  ;;  %v1437_v37 = vmax.f32 %v1304_v30, 0.0  ;;  %v1059_v30 = vpop.permute.xlu1 %1058 }
 0x321   : > { %v1438_v36 = vmax.f32 %v1306_v32, 0.0 }
 0x322   : > { %v1439_v38 = vmax.f32 %v1308_v34, 0.0 }
 0x323   : > { %v1492_v39 = vpack.c.bf16 %v1438_v36, %v1436_v35 }
 0x324   : > { %v1493_v41 = vpack.c.bf16 %v1439_v38, %v1437_v37  ;;  %v1311_v42 = vpop.f32.mrb[36].mxu0 }
 0x325   : > { %v1312_v43 = vadd.f32 %v1311_v42, %v1024_v40  ;;  %v1313_v44 = vpop.f32.mrb[37].mxu0 }
 0x326   : > { %v1314_v46 = vadd.f32 %v1313_v44, %v1024_v40  ;;  %v1315_v47 = vpop.f32.mrb[38].mxu0  ;;  %1716 = vmatprep.subr.bf16.mxu1 %v1493_v41  ;;  %v1064_v41 = vpop.permute.xlu0 %1063 }
 0x327   : > { %v1316_v48 = vadd.f32 %v1315_v47, %v1029_v45  ;;  %v1317_v49 = vpop.f32.mrb[39].mxu0  ;;  %1717 = vmatpush1.bf16.msra.mxu1 %v1492_v39  ;;  %v1440_v51 = vmax.f32 %v1312_v43, 0.0 }
 0x328   : > { %v1318_v50 = vadd.f32 %v1317_v49, %v1029_v45  ;;  %v1441_v53 = vmax.f32 %v1314_v46, 0.0  ;;  %v1069_v46 = vpop.permute.xlu1 %1068 }
 0x329   : > { %v1442_v52 = vmax.f32 %v1316_v48, 0.0 }
 0x32a   : > { %v1443_v54 = vmax.f32 %v1318_v50, 0.0 }
 0x32b   : > { %v1494_v55 = vpack.c.bf16 %v1442_v52, %v1440_v51 }
 0x32c   : > { %v1495_v57 = vpack.c.bf16 %v1443_v54, %v1441_v53  ;;  %v1321_v58 = vpop.f32.mrb[40].mxu0 }
 0x32d   : > { %v1322_v59 = vadd.f32 %v1321_v58, %v1034_v56  ;;  %v1323_v60 = vpop.f32.mrb[41].mxu0 }
 0x32e   : > { %v1324_v62 = vadd.f32 %v1323_v60, %v1034_v56  ;;  %v1325_v63 = vpop.f32.mrb[42].mxu0  ;;  %1718 = vmatprep.subr.bf16.mxu1 %v1495_v57  ;;  %v1074_v57 = vpop.permute.xlu0 %1073 }
 0x32f   : > { %v1326_v0 = vadd.f32 %v1325_v63, %v1039_v61  ;;  %v1327_v2 = vpop.f32.mrb[43].mxu0  ;;  %1719 = vmatpush1.bf16.msra.mxu1 %v1494_v55  ;;  %v1444_v4 = vmax.f32 %v1322_v59, 0.0 }
 0x330   : > { %v1328_v3 = vadd.f32 %v1327_v2, %v1039_v61  ;;  %v1445_v6 = vmax.f32 %v1324_v62, 0.0  ;;  %v1079_v62 = vpop.permute.xlu1 %1078 }
 0x331   : > { %v1446_v5 = vmax.f32 %v1326_v0, 0.0 }
 0x332   : > { %v1447_v7 = vmax.f32 %v1328_v3, 0.0 }
 0x333   : > { %v1496_v8 = vpack.c.bf16 %v1446_v5, %v1444_v4 }
 0x334   : > { %v1497_v10 = vpack.c.bf16 %v1447_v7, %v1445_v6  ;;  %v1331_v11 = vpop.f32.mrb[44].mxu0 }
 0x335   : > { %v1332_v12 = vadd.f32 %v1331_v11, %v1044_v9  ;;  %v1333_v13 = vpop.f32.mrb[45].mxu0 }
 0x336   : > { %v1334_v15 = vadd.f32 %v1333_v13, %v1044_v9  ;;  %v1335_v16 = vpop.f32.mrb[46].mxu0  ;;  %1720 = vmatprep.subr.bf16.mxu1 %v1497_v10  ;;  %v1084_v10 = vpop.permute.xlu0 %1083 }
 0x337   : > { %v1336_v17 = vadd.f32 %v1335_v16, %v1049_v14  ;;  %v1337_v18 = vpop.f32.mrb[47].mxu0  ;;  %1721 = vmatpush1.bf16.msra.mxu1 %v1496_v8  ;;  %v1448_v20 = vmax.f32 %v1332_v12, 0.0 }
 0x338   : > { %v1338_v19 = vadd.f32 %v1337_v18, %v1049_v14  ;;  %v1449_v22 = vmax.f32 %v1334_v15, 0.0  ;;  %v1089_v15 = vpop.permute.xlu1 %1088 }
 0x339   : > { %v1450_v21 = vmax.f32 %v1336_v17, 0.0 }
 0x33a   : > { %v1451_v23 = vmax.f32 %v1338_v19, 0.0 }
 0x33b   : > { %v1498_v24 = vpack.c.bf16 %v1450_v21, %v1448_v20 }
 0x33c   : > { %v1499_v26 = vpack.c.bf16 %v1451_v23, %v1449_v22  ;;  %v1341_v27 = vpop.f32.mrb[48].mxu0 }
 0x33d   : > { %v1342_v28 = vadd.f32 %v1341_v27, %v1054_v25  ;;  %v1343_v29 = vpop.f32.mrb[49].mxu0 }
 0x33e   : > { %v1344_v31 = vadd.f32 %v1343_v29, %v1054_v25  ;;  %v1345_v32 = vpop.f32.mrb[50].mxu0  ;;  %1722 = vmatprep.subr.bf16.mxu1 %v1499_v26  ;;  %v1094_v26 = vpop.permute.xlu0 %1093 }
 0x33f   : > { %v1346_v33 = vadd.f32 %v1345_v32, %v1059_v30  ;;  %v1347_v34 = vpop.f32.mrb[51].mxu0  ;;  %1723 = vmatpush1.bf16.msra.mxu1 %v1498_v24  ;;  %v1452_v36 = vmax.f32 %v1342_v28, 0.0 }
 0x340   : > { %v1348_v35 = vadd.f32 %v1347_v34, %v1059_v30  ;;  %v1453_v38 = vmax.f32 %v1344_v31, 0.0  ;;  %v1099_v31 = vpop.permute.xlu1 %1098 }
 0x341   : > { %v1454_v37 = vmax.f32 %v1346_v33, 0.0 }
 0x342   : > { %v1455_v39 = vmax.f32 %v1348_v35, 0.0 }
 0x343   : > { %v1500_v40 = vpack.c.bf16 %v1454_v37, %v1452_v36 }
 0x344   : > { %v1501_v42 = vpack.c.bf16 %v1455_v39, %v1453_v38  ;;  %v1351_v43 = vpop.f32.mrb[52].mxu0 }
 0x345   : > { %v1352_v44 = vadd.f32 %v1351_v43, %v1064_v41  ;;  %v1353_v45 = vpop.f32.mrb[53].mxu0 }
 0x346   : > { %v1354_v47 = vadd.f32 %v1353_v45, %v1064_v41  ;;  %v1355_v48 = vpop.f32.mrb[54].mxu0  ;;  %1724 = vmatprep.subr.bf16.mxu1 %v1501_v42  ;;  %v1104_v42 = vpop.permute.xlu0 %1103 }
 0x347   : > { %v1356_v49 = vadd.f32 %v1355_v48, %v1069_v46  ;;  %v1357_v50 = vpop.f32.mrb[55].mxu0  ;;  %1725 = vmatpush1.bf16.msra.mxu1 %v1500_v40  ;;  %v1456_v52 = vmax.f32 %v1352_v44, 0.0 }
 0x348   : > { %v1358_v51 = vadd.f32 %v1357_v50, %v1069_v46  ;;  %v1457_v54 = vmax.f32 %v1354_v47, 0.0  ;;  %v1109_v47 = vpop.permute.xlu1 %1108 }
 0x349   : > { %v1458_v53 = vmax.f32 %v1356_v49, 0.0 }
 0x34a   : > { %v1459_v55 = vmax.f32 %v1358_v51, 0.0 }
 0x34b   : > { %v1502_v56 = vpack.c.bf16 %v1458_v53, %v1456_v52 }
 0x34c   : > { %v1503_v58 = vpack.c.bf16 %v1459_v55, %v1457_v54  ;;  %v1361_v59 = vpop.f32.mrb[56].mxu0 }
 0x34d   : > { %v1362_v60 = vadd.f32 %v1361_v59, %v1074_v57  ;;  %v1363_v61 = vpop.f32.mrb[57].mxu0 }
 0x34e   : > { %v1364_v63 = vadd.f32 %v1363_v61, %v1074_v57  ;;  %v1365_v0 = vpop.f32.mrb[58].mxu0  ;;  %1726 = vmatprep.subr.bf16.mxu1 %v1503_v58  ;;  %v1114_v58 = vpop.permute.xlu0 %1113 }
 0x34f   : > { %v1366_v2 = vadd.f32 %v1365_v0, %v1079_v62  ;;  %v1367_v3 = vpop.f32.mrb[59].mxu0  ;;  %1727 = vmatpush1.bf16.msra.mxu1 %v1502_v56  ;;  %v1460_v5 = vmax.f32 %v1362_v60, 0.0 }
 0x350   : > { %v1368_v4 = vadd.f32 %v1367_v3, %v1079_v62  ;;  %v1461_v7 = vmax.f32 %v1364_v63, 0.0  ;;  %v1119_v63 = vpop.permute.xlu1 %1118 }
 0x351   : > { %v1462_v6 = vmax.f32 %v1366_v2, 0.0 }
 0x352   : > { %v1463_v8 = vmax.f32 %v1368_v4, 0.0 }
 0x353   : > { %v1504_v9 = vpack.c.bf16 %v1462_v6, %v1460_v5 }
 0x354   : > { %v1505_v11 = vpack.c.bf16 %v1463_v8, %v1461_v7  ;;  %v1371_v12 = vpop.f32.mrb[60].mxu0 }
 0x355   : > { %v1372_v13 = vadd.f32 %v1371_v12, %v1084_v10  ;;  %v1373_v14 = vpop.f32.mrb[61].mxu0 }
 0x356   : > { %v1374_v16 = vadd.f32 %v1373_v14, %v1084_v10  ;;  %v1375_v17 = vpop.f32.mrb[62].mxu0  ;;  %1728 = vmatprep.subr.bf16.mxu1 %v1505_v11  ;;  %v1124_v11 = vpop.permute.xlu0 %1123 }
 0x357   : > { %v1376_v18 = vadd.f32 %v1375_v17, %v1089_v15  ;;  %v1377_v19 = vpop.f32.mrb[63].mxu0  ;;  %1729 = vmatpush1.bf16.msra.mxu1 %v1504_v9  ;;  %v1464_v21 = vmax.f32 %v1372_v13, 0.0 }
 0x358   : > { %v1378_v20 = vadd.f32 %v1377_v19, %v1089_v15  ;;  %v1465_v23 = vmax.f32 %v1374_v16, 0.0  ;;  %v1129_v16 = vpop.permute.xlu1 %1128 }
 0x359   : > { %v1466_v22 = vmax.f32 %v1376_v18, 0.0 }
 0x35a   : > { %v1467_v24 = vmax.f32 %v1378_v20, 0.0 }
 0x35b   : > { %v1506_v25 = vpack.c.bf16 %v1466_v22, %v1464_v21 }
 0x35c   : > { %v1507_v27 = vpack.c.bf16 %v1467_v24, %v1465_v23  ;;  %v1381_v28 = vpop.f32.mrb[64].mxu0 }
 0x35d   : > { %v1382_v29 = vadd.f32 %v1381_v28, %v1094_v26  ;;  %v1383_v30 = vpop.f32.mrb[65].mxu0  ;;  %v2292_v28 = vld [vmem:[%s2836_s6] ss:$8 sps:$4 sm:$0xff]  }
 0x35e   : > { %v1384_v32 = vadd.f32 %v1383_v30, %v1094_v26  ;;  %v1385_v33 = vpop.f32.mrb[66].mxu0  ;;  %1730 = vmatprep.subr.bf16.mxu1 %v1507_v27  ;;  %v2297_v30 = vld [vmem:[%s2836_s6 + $0x10] ss:$8 sps:$4 sm:$0xff]  }
 0x35f   : > { %v1386_v34 = vadd.f32 %v1385_v33, %v1099_v31  ;;  %v1387_v35 = vpop.f32.mrb[67].mxu0  ;;  %1731 = vmatpush1.bf16.msra.mxu1 %v1506_v25  ;;  %v1468_v37 = vmax.f32 %v1382_v29, 0.0  ;;  %v2295_v29 = vld [vmem:[%s2836_s6 + $0x14] ss:$8 sps:$4 sm:$0xff]  }
 0x360   : > { %v1388_v36 = vadd.f32 %v1387_v35, %v1099_v31  ;;  %v1469_v39 = vmax.f32 %v1384_v32, 0.0  ;;  %v2298_v31 = vld [vmem:[%s2836_s6 + $0x24] ss:$8 sps:$4 sm:$0xff]   ;;  %v2300_v32 = vld [vmem:[%s2836_s6 + $0x20] ss:$8 sps:$4 sm:$0xff]  }
 0x361   : > { %v1470_v38 = vmax.f32 %v1386_v34, 0.0  ;;  %v2301_v33 = vld [vmem:[%s2836_s6 + $0x34] ss:$8 sps:$4 sm:$0xff]   ;;  %v2303_v34 = vld [vmem:[%s2836_s6 + $0x30] ss:$8 sps:$4 sm:$0xff]  }
 0x362   : > { %v1471_v40 = vmax.f32 %v1388_v36, 0.0  ;;  %v2304_v35 = vld [vmem:[%s2836_s6 + $0x44] ss:$8 sps:$4 sm:$0xff]   ;;  %v2306_v36 = vld [vmem:[%s2836_s6 + $0x40] ss:$8 sps:$4 sm:$0xff]  }
 0x363   : > { %v1508_v41 = vpack.c.bf16 %v1470_v38, %v1468_v37  ;;  %v2307_v37 = vld [vmem:[%s2836_s6 + $0x54] ss:$8 sps:$4 sm:$0xff]   ;;  %v2309_v38 = vld [vmem:[%s2836_s6 + $0x50] ss:$8 sps:$4 sm:$0xff]  }
 0x364   : > { %v1509_v43 = vpack.c.bf16 %v1471_v40, %v1469_v39  ;;  %v1391_v44 = vpop.f32.mrb[68].mxu0  ;;  %v2310_v39 = vld [vmem:[%s2836_s6 + $0x64] ss:$8 sps:$4 sm:$0xff]   ;;  %v2312_v40 = vld [vmem:[%s2836_s6 + $0x60] ss:$8 sps:$4 sm:$0xff]  }
 0x365   : > { %v1392_v45 = vadd.f32 %v1391_v44, %v1104_v42  ;;  %v1393_v46 = vpop.f32.mrb[69].mxu0 }
 0x366   : > { %v1394_v48 = vadd.f32 %v1393_v46, %v1104_v42  ;;  %v1395_v49 = vpop.f32.mrb[70].mxu0  ;;  %1732 = vmatprep.subr.bf16.mxu1 %v1509_v43  ;;  %v2315_v42 = vld [vmem:[%s2836_s6 + $0x70] ss:$8 sps:$4 sm:$0xff]   ;;  %v1551_v43 = vpop.permute.xlu0 %1550 }
 0x367   : > { %v1396_v50 = vadd.f32 %v1395_v49, %v1109_v47  ;;  %v1397_v51 = vpop.f32.mrb[71].mxu0  ;;  %1733 = vmatpush1.bf16.msra.mxu1 %v1508_v41  ;;  %v1472_v53 = vmax.f32 %v1392_v45, 0.0  ;;  %v2313_v41 = vld [vmem:[%s2836_s6 + $0x74] ss:$8 sps:$4 sm:$0xff]  }
 0x368   : > { %v1398_v52 = vadd.f32 %v1397_v51, %v1109_v47  ;;  %v1473_v55 = vmax.f32 %v1394_v48, 0.0  ;;  %v1556_v47 = vpop.permute.xlu1 %1555 }
 0x369   : > { %v1474_v54 = vmax.f32 %v1396_v50, 0.0 }
 0x36a   : > { %v1475_v56 = vmax.f32 %v1398_v52, 0.0 }
 0x36b   : > { %v1510_v57 = vpack.c.bf16 %v1474_v54, %v1472_v53 }
 0x36c   : > { %v1511_v59 = vpack.c.bf16 %v1475_v56, %v1473_v55  ;;  %v1401_v60 = vpop.f32.mrb[72].mxu0 }
 0x36d   : > { %v1402_v61 = vadd.f32 %v1401_v60, %v1114_v58  ;;  %v1403_v62 = vpop.f32.mrb[73].mxu0 }
 0x36e   : > { %v1404_v0 = vadd.f32 %v1403_v62, %v1114_v58  ;;  %v1405_v2 = vpop.f32.mrb[74].mxu0  ;;  %1734 = vmatprep.subr.bf16.mxu1 %v1511_v59  ;;  %v1561_v58 = vpop.permute.xlu0 %1560 }
 0x36f   : > { %v1406_v3 = vadd.f32 %v1405_v2, %v1119_v63  ;;  %v1407_v4 = vpop.f32.mrb[75].mxu0  ;;  %1735 = vmatpush1.bf16.msra.mxu1 %v1510_v57  ;;  %v1476_v6 = vmax.f32 %v1402_v61, 0.0 }
 0x370   : > { %v1408_v5 = vadd.f32 %v1407_v4, %v1119_v63  ;;  %v1477_v8 = vmax.f32 %v1404_v0, 0.0  ;;  %v1566_v63 = vpop.permute.xlu1 %1565 }
 0x371   : > { %v1478_v7 = vmax.f32 %v1406_v3, 0.0 }
 0x372   : > { %v1479_v9 = vmax.f32 %v1408_v5, 0.0 }
 0x373   : > { %v1512_v10 = vpack.c.bf16 %v1478_v7, %v1476_v6 }
 0x374   : > { %v1513_v12 = vpack.c.bf16 %v1479_v9, %v1477_v8  ;;  %v1411_v13 = vpop.f32.mrb[76].mxu0 }
 0x375   : > { %v1412_v14 = vadd.f32 %v1411_v13, %v1124_v11  ;;  %v1413_v15 = vpop.f32.mrb[77].mxu0 }
 0x376   : > { %v1414_v17 = vadd.f32 %v1413_v15, %v1124_v11  ;;  %v1415_v18 = vpop.f32.mrb[78].mxu0  ;;  %1736 = vmatprep.subr.bf16.mxu1 %v1513_v12  ;;  %v1571_v11 = vpop.permute.xlu0 %1570 }
 0x377   : > { %v1416_v19 = vadd.f32 %v1415_v18, %v1129_v16  ;;  %v1417_v20 = vpop.f32.mrb[79].mxu0  ;;  %1737 = vmatpush1.bf16.msra.mxu1 %v1512_v10  ;;  %v1480_v22 = vmax.f32 %v1412_v14, 0.0 }
 0x378   : > { %v1418_v21 = vadd.f32 %v1417_v20, %v1129_v16  ;;  %v1481_v24 = vmax.f32 %v1414_v17, 0.0  ;;  %v1576_v16 = vpop.permute.xlu1 %1575 }
 0x379   : > { %v1482_v23 = vmax.f32 %v1416_v19, 0.0 }
 0x37a   : > { %v1483_v25 = vmax.f32 %v1418_v21, 0.0 }
 0x37b   : > { %v1514_v26 = vpack.c.bf16 %v1482_v23, %v1480_v22 }
 0x37c   : > { %v1515_v27 = vpack.c.bf16 %v1483_v25, %v1481_v24 }
 0x37e   : > { %1738 = vmatprep.subr.bf16.mxu1 %v1515_v27  ;;  %v1581_v27 = vpop.permute.xlu0 %1580 }
 0x37f   : > { %1739 = vmatpush1.bf16.msra.mxu1 %v1514_v26 }
 0x382   : > { %1741 = vmatmul.mubr.bf16.vlgmr.msra.gmra.mrb[32].mxu1 %v2292_v28 }
 0x383   : > { %1750 = vmatprep.mubr.bf16.mxu1 %v2295_v29 }
 0x38a   : > { %1751 = vmatmul.mubr.bf16.gmra.mrb[36].mxu1 %v2297_v30 }
 0x38b   : > { %1760 = vmatprep.mubr.bf16.mxu1 %v2298_v31 }
 0x392   : > { %1761 = vmatmul.mubr.bf16.gmra.mrb[40].mxu1 %v2300_v32  ;;  %v1586_v32 = vpop.permute.xlu1 %1585 }
 0x393   : > { %1770 = vmatprep.mubr.bf16.mxu1 %v2301_v33 }
 0x39a   : > { %1771 = vmatmul.mubr.bf16.gmra.mrb[44].mxu1 %v2303_v34 }
 0x39b   : > { %1780 = vmatprep.mubr.bf16.mxu1 %v2304_v35 }
 0x3a2   : > { %1781 = vmatmul.mubr.bf16.gmra.mrb[48].mxu1 %v2306_v36 }
 0x3a3   : > { %1790 = vmatprep.mubr.bf16.mxu1 %v2307_v37 }
 0x3aa   : > { %1791 = vmatmul.mubr.bf16.gmra.mrb[52].mxu1 %v2309_v38 }
 0x3ab   : > { %1800 = vmatprep.mubr.bf16.mxu1 %v2310_v39 }
 0x3b2   : > { %1801 = vmatmul.mubr.bf16.gmra.mrb[56].mxu1 %v2312_v40 }
 0x3b3   : > { %1810 = vmatprep.mubr.bf16.mxu1 %v2313_v41 }
 0x3ba   : > { %1811 = vmatmul.mubr.bf16.gmra.mrb[60].mxu1 %v2315_v42 }
 0x3bb   : > { %1981 = vmatprep.mubr.bf16.mxu1 %v2328_v1 }
 0x455   : > { %v1742_v44 = vpop.f32.mrb[32].mxu1 }
 0x456   : > { %v1743_v45 = vadd.f32 %v1742_v44, %v1551_v43  ;;  %v1744_v46 = vpop.f32.mrb[33].mxu1 }
 0x457   : > { %v1745_v48 = vadd.f32 %v1744_v46, %v1551_v43  ;;  %v1746_v49 = vpop.f32.mrb[34].mxu1  ;;  %v1591_v43 = vpop.permute.xlu0 %1590 }
 0x458   : > { %v1747_v50 = vadd.f32 %v1746_v49, %v1556_v47  ;;  %v1748_v51 = vpop.f32.mrb[35].mxu1  ;;  %v1821_v53 = vmax.f32 %v1743_v45, 0.0 }
 0x459   : > { %v1749_v52 = vadd.f32 %v1748_v51, %v1556_v47  ;;  %v1822_v55 = vmax.f32 %v1745_v48, 0.0  ;;  %v1596_v48 = vpop.permute.xlu1 %1595 }
 0x45a   : > { %v1823_v54 = vmax.f32 %v1747_v50, 0.0 }
 0x45b   : > { %v1824_v56 = vmax.f32 %v1749_v52, 0.0 }
 0x45c   : > { %v1853_v57 = vpack.c.bf16 %v1823_v54, %v1821_v53 }
 0x45d   : > { %v1854_v59 = vpack.c.bf16 %v1824_v56, %v1822_v55  ;;  %v1752_v60 = vpop.f32.mrb[36].mxu1 }
 0x45e   : > { %v1753_v61 = vadd.f32 %v1752_v60, %v1561_v58  ;;  %v1754_v62 = vpop.f32.mrb[37].mxu1 }
 0x45f   : > { %v1755_v0 = vadd.f32 %v1754_v62, %v1561_v58  ;;  %v1756_v2 = vpop.f32.mrb[38].mxu1  ;;  %1949 = vmatprep.subr.bf16.mxu1 %v1854_v59  ;;  %v1601_v59 = vpop.permute.xlu0 %1600 }
 0x460   : > { %v1757_v3 = vadd.f32 %v1756_v2, %v1566_v63  ;;  %v1758_v4 = vpop.f32.mrb[39].mxu1  ;;  %1950 = vmatpush1.bf16.msra.mxu1 %v1853_v57  ;;  %v1825_v6 = vmax.f32 %v1753_v61, 0.0 }
 0x461   : > { %v1759_v5 = vadd.f32 %v1758_v4, %v1566_v63  ;;  %v1826_v8 = vmax.f32 %v1755_v0, 0.0  ;;  %v1606_v0 = vpop.permute.xlu1 %1605 }
 0x462   : > { %v1827_v7 = vmax.f32 %v1757_v3, 0.0 }
 0x463   : > { %v1828_v9 = vmax.f32 %v1759_v5, 0.0 }
 0x464   : > { %v1855_v10 = vpack.c.bf16 %v1827_v7, %v1825_v6 }
 0x465   : > { %v1856_v12 = vpack.c.bf16 %v1828_v9, %v1826_v8  ;;  %v1762_v13 = vpop.f32.mrb[40].mxu1 }
 0x466   : > { %v1763_v14 = vadd.f32 %v1762_v13, %v1571_v11  ;;  %v1764_v15 = vpop.f32.mrb[41].mxu1 }
 0x467   : > { %v1765_v17 = vadd.f32 %v1764_v15, %v1571_v11  ;;  %v1766_v18 = vpop.f32.mrb[42].mxu1  ;;  %1951 = vmatprep.subr.bf16.mxu1 %v1856_v12  ;;  %v1611_v12 = vpop.permute.xlu0 %1610 }
 0x468   : > { %v1767_v19 = vadd.f32 %v1766_v18, %v1576_v16  ;;  %v1768_v20 = vpop.f32.mrb[43].mxu1  ;;  %1952 = vmatpush1.bf16.msra.mxu1 %v1855_v10  ;;  %v1829_v22 = vmax.f32 %v1763_v14, 0.0 }
 0x469   : > { %v1769_v21 = vadd.f32 %v1768_v20, %v1576_v16  ;;  %v1830_v24 = vmax.f32 %v1765_v17, 0.0  ;;  %v1616_v17 = vpop.permute.xlu1 %1615 }
 0x46a   : > { %v1831_v23 = vmax.f32 %v1767_v19, 0.0 }
 0x46b   : > { %v1832_v25 = vmax.f32 %v1769_v21, 0.0 }
 0x46c   : > { %v1857_v26 = vpack.c.bf16 %v1831_v23, %v1829_v22 }
 0x46d   : > { %v1858_v28 = vpack.c.bf16 %v1832_v25, %v1830_v24  ;;  %v1772_v29 = vpop.f32.mrb[44].mxu1 }
 0x46e   : > { %v1773_v30 = vadd.f32 %v1772_v29, %v1581_v27  ;;  %v1774_v31 = vpop.f32.mrb[45].mxu1 }
 0x46f   : > { %v1775_v33 = vadd.f32 %v1774_v31, %v1581_v27  ;;  %v1776_v34 = vpop.f32.mrb[46].mxu1  ;;  %1953 = vmatprep.subr.bf16.mxu1 %v1858_v28  ;;  %v1621_v28 = vpop.permute.xlu0 %1620 }
 0x470   : > { %v1777_v35 = vadd.f32 %v1776_v34, %v1586_v32  ;;  %v1778_v36 = vpop.f32.mrb[47].mxu1  ;;  %1954 = vmatpush1.bf16.msra.mxu1 %v1857_v26  ;;  %v1833_v38 = vmax.f32 %v1773_v30, 0.0 }
 0x471   : > { %v1779_v37 = vadd.f32 %v1778_v36, %v1586_v32  ;;  %v1834_v40 = vmax.f32 %v1775_v33, 0.0  ;;  %v1626_v33 = vpop.permute.xlu1 %1625 }
 0x472   : > { %v1835_v39 = vmax.f32 %v1777_v35, 0.0 }
 0x473   : > { %v1836_v41 = vmax.f32 %v1779_v37, 0.0 }
 0x474   : > { %v1859_v42 = vpack.c.bf16 %v1835_v39, %v1833_v38 }
 0x475   : > { %v1860_v44 = vpack.c.bf16 %v1836_v41, %v1834_v40  ;;  %v1782_v45 = vpop.f32.mrb[48].mxu1 }
 0x476   : > { %v1783_v46 = vadd.f32 %v1782_v45, %v1591_v43  ;;  %v1784_v47 = vpop.f32.mrb[49].mxu1  ;;  %v2316_v45 = vld [vmem:[%s2838_s8] sm:$0xff]  }
 0x477   : > { %v1785_v49 = vadd.f32 %v1784_v47, %v1591_v43  ;;  %v1786_v50 = vpop.f32.mrb[50].mxu1  ;;  %1955 = vmatprep.subr.bf16.mxu1 %v1860_v44  ;;  %v2318_v47 = vld [vmem:[%s2838_s8 + $0x10] sm:$0xff]  }
 0x478   : > { %v1787_v51 = vadd.f32 %v1786_v50, %v1596_v48  ;;  %v1788_v52 = vpop.f32.mrb[51].mxu1  ;;  %1956 = vmatpush1.bf16.msra.mxu1 %v1859_v42  ;;  %v1837_v54 = vmax.f32 %v1783_v46, 0.0  ;;  %v2317_v46 = vld [vmem:[%s2838_s8 + $0x8] sm:$0xff]  }
 0x479   : > { %v1789_v53 = vadd.f32 %v1788_v52, %v1596_v48  ;;  %v1838_v56 = vmax.f32 %v1785_v49, 0.0  ;;  %v2319_v48 = vld [vmem:[%s2838_s8 + $0x18] sm:$0xff]   ;;  %v1888_v49 = vpop.permute.xlu0 %1887 }
 0x47a   : > { %v1839_v55 = vmax.f32 %v1787_v51, 0.0 }
 0x47b   : > { %v1840_v57 = vmax.f32 %v1789_v53, 0.0  ;;  %v1893_v53 = vpop.permute.xlu1 %1892 }
 0x47c   : > { %v1861_v58 = vpack.c.bf16 %v1839_v55, %v1837_v54 }
 0x47d   : > { %v1862_v60 = vpack.c.bf16 %v1840_v57, %v1838_v56  ;;  %v1792_v61 = vpop.f32.mrb[52].mxu1 }
 0x47e   : > { %v1793_v62 = vadd.f32 %v1792_v61, %v1601_v59  ;;  %v1794_v63 = vpop.f32.mrb[53].mxu1 }
 0x47f   : > { %v1795_v2 = vadd.f32 %v1794_v63, %v1601_v59  ;;  %v1796_v3 = vpop.f32.mrb[54].mxu1  ;;  %1957 = vmatprep.subr.bf16.mxu1 %v1862_v60  ;;  %v1898_v63 = vpop.permute.xlu0 %1897 }
 0x480   : > { %v1797_v4 = vadd.f32 %v1796_v3, %v1606_v0  ;;  %v1798_v5 = vpop.f32.mrb[55].mxu1  ;;  %1958 = vmatpush1.bf16.msra.mxu1 %v1861_v58  ;;  %v1841_v7 = vmax.f32 %v1793_v62, 0.0 }
 0x481   : > { %v1799_v6 = vadd.f32 %v1798_v5, %v1606_v0  ;;  %v1842_v9 = vmax.f32 %v1795_v2, 0.0  ;;  %v1903_v5 = vpop.permute.xlu1 %1902 }
 0x482   : > { %v1843_v8 = vmax.f32 %v1797_v4, 0.0 }
 0x483   : > { %v1844_v10 = vmax.f32 %v1799_v6, 0.0 }
 0x484   : > { %v1863_v11 = vpack.c.bf16 %v1843_v8, %v1841_v7 }
 0x485   : > { %v1864_v13 = vpack.c.bf16 %v1844_v10, %v1842_v9  ;;  %v1802_v14 = vpop.f32.mrb[56].mxu1 }
 0x486   : > { %v1803_v15 = vadd.f32 %v1802_v14, %v1611_v12  ;;  %v1804_v16 = vpop.f32.mrb[57].mxu1 }
 0x487   : > { %v1805_v18 = vadd.f32 %v1804_v16, %v1611_v12  ;;  %v1806_v19 = vpop.f32.mrb[58].mxu1  ;;  %1959 = vmatprep.subr.bf16.mxu1 %v1864_v13  ;;  %v1908_v16 = vpop.permute.xlu0 %1907 }
 0x488   : > { %v1807_v20 = vadd.f32 %v1806_v19, %v1616_v17  ;;  %v1808_v21 = vpop.f32.mrb[59].mxu1  ;;  %1960 = vmatpush1.bf16.msra.mxu1 %v1863_v11  ;;  %v1845_v23 = vmax.f32 %v1803_v15, 0.0 }
 0x489   : > { %v1809_v22 = vadd.f32 %v1808_v21, %v1616_v17  ;;  %v1846_v25 = vmax.f32 %v1805_v18, 0.0  ;;  %v1913_v21 = vpop.permute.xlu1 %1912 }
 0x48a   : > { %v1847_v24 = vmax.f32 %v1807_v20, 0.0 }
 0x48b   : > { %v1848_v26 = vmax.f32 %v1809_v22, 0.0 }
 0x48c   : > { %v1865_v27 = vpack.c.bf16 %v1847_v24, %v1845_v23 }
 0x48d   : > { %v1866_v29 = vpack.c.bf16 %v1848_v26, %v1846_v25  ;;  %v1812_v30 = vpop.f32.mrb[60].mxu1 }
 0x48e   : > { %v1813_v31 = vadd.f32 %v1812_v30, %v1621_v28  ;;  %v1814_v32 = vpop.f32.mrb[61].mxu1 }
 0x48f   : > { %v1815_v34 = vadd.f32 %v1814_v32, %v1621_v28  ;;  %v1816_v35 = vpop.f32.mrb[62].mxu1  ;;  %1961 = vmatprep.subr.bf16.mxu1 %v1866_v29  ;;  %v1918_v32 = vpop.permute.xlu0 %1917 }
 0x490   : > { %v1817_v36 = vadd.f32 %v1816_v35, %v1626_v33  ;;  %v1818_v37 = vpop.f32.mrb[63].mxu1  ;;  %1962 = vmatpush1.bf16.msra.mxu1 %v1865_v27  ;;  %v1849_v39 = vmax.f32 %v1813_v31, 0.0 }
 0x491   : > { %v1819_v38 = vadd.f32 %v1818_v37, %v1626_v33  ;;  %v1850_v41 = vmax.f32 %v1815_v34, 0.0  ;;  %v1923_v37 = vpop.permute.xlu1 %1922 }
 0x492   : > { %v1851_v40 = vmax.f32 %v1817_v36, 0.0 }
 0x493   : > { %v1852_v42 = vmax.f32 %v1819_v38, 0.0 }
 0x494   : > { %v1867_v43 = vpack.c.bf16 %v1851_v40, %v1849_v39 }
 0x495   : > { %v1868_v44 = vpack.c.bf16 %v1852_v42, %v1850_v41 }
 0x497   : > { %1963 = vmatprep.subr.bf16.mxu1 %v1868_v44 }
 0x498   : > { %1964 = vmatpush1.bf16.msra.mxu1 %v1867_v43 }
 0x49b   : > { %1982 = vmatmul.mubr.bf16.vlgmr.msra.gmra.mrb[64].mxu1 %v2316_v45 }
 0x49c   : > { %1991 = vmatprep.mubr.bf16.mxu1 %v2328_v1 }
 0x4a3   : > { %1992 = vmatmul.mubr.bf16.gmra.mrb[68].mxu1 %v2317_v46 }
 0x4a4   : > { %2001 = vmatprep.mubr.bf16.mxu1 %v2328_v1 }
 0x4ab   : > { %2002 = vmatmul.mubr.bf16.gmra.mrb[72].mxu1 %v2318_v47 }
 0x4ac   : > { %2011 = vmatprep.mubr.bf16.mxu1 %v2328_v1 }
 0x4b3   : > { %2012 = vmatmul.mubr.bf16.gmra.mrb[76].mxu1 %v2319_v48 }
 0x56e   : > { %v1983_v50 = vpop.f32.mrb[64].mxu1 }
 0x56f   : > { %v1984_v51 = vadd.f32 %v1983_v50, %v1888_v49  ;;  %v1985_v52 = vpop.f32.mrb[65].mxu1  ;;  %v2053_v50 = vlaneseq }
 0x570   : > { %v1986_v54 = vadd.f32 %v1985_v52, %v1888_v49  ;;  %v1987_v55 = vpop.f32.mrb[66].mxu1  ;;  %v2046_v49 = vld [vmem:[%s2840_s10] sm:$0x1] }
 0x571   : > { %v1988_v56 = vadd.f32 %v1987_v55, %v1893_v53  ;;  %v1989_v57 = vpop.f32.mrb[67].mxu1  ;;  %v2022_v59 = vmax.f32 %v1984_v51, 0.0  ;;  %v2054_v51 = vshrl.u32 %v2053_v50, 7  ;;  %v2051_v55 = vpop.permute.xlu0 %2050  ;;  %vm2123_vm3 = vcmp.lt.s32.totalorder %v2053_v50, 256 }
 0x572   : > { %v1990_v58 = vadd.f32 %v1989_v57, %v1893_v53  ;;  %v2023_v61 = vmax.f32 %v1986_v54, 0.0  ;;  %v2329_v53 = vmov 1966171168  }
 0x573   : > { %v2024_v60 = vmax.f32 %v1988_v56, 0.0  ;;  %v2055_v52 = vsub.s32 0, %v2054_v51  ;;  %v2107_v54 = vunpack.c.l.s4 %v2329_v53 }
 0x574   : > { %v2025_v62 = vmax.f32 %v1990_v58, 0.0 }
 0x575   : > { %v2038_v1 = vpack.c.bf16 %v2024_v60, %v2022_v59  ;;  %v2056_v56 = vrot.slane %v2051_v55, %v2055_v52  ;;  %v2108_v57 = vunpack.c.0.s8 %v2107_v54 }
 0x576   : > { %v2039_v0 = vpack.c.bf16 %v2025_v62, %v2023_v61  ;;  %v1993_v2 = vpop.f32.mrb[68].mxu1 }
 0x577   : > { %v1994_v3 = vadd.f32 %v1993_v2, %v1898_v63  ;;  %v1995_v4 = vpop.f32.mrb[69].mxu1 }
 0x578   : > { %v1996_v6 = vadd.f32 %v1995_v4, %v1898_v63  ;;  %v1997_v7 = vpop.f32.mrb[70].mxu1  ;;  %2060 = vmatprep.subr.bf16.mxu0 %v2039_v0  ;;  %v2111_v0 = vsub.s32 %v2108_v57, %v2054_v51 }
 0x579   : > { %v1998_v8 = vadd.f32 %v1997_v7, %v1903_v5  ;;  %v1999_v9 = vpop.f32.mrb[71].mxu1  ;;  %2061 = vmatpush1.bf16.msra.mxu0 %v2038_v1  ;;  %v2026_v11 = vmax.f32 %v1994_v3, 0.0 }
 0x57a   : > { %v2000_v10 = vadd.f32 %v1999_v9, %v1903_v5  ;;  %v2027_v13 = vmax.f32 %v1996_v6, 0.0 }
 0x57b   : > { %v2028_v12 = vmax.f32 %v1998_v8, 0.0 }
 0x57c   : > { %v2029_v14 = vmax.f32 %v2000_v10, 0.0 }
 0x57d   : > { %v2040_v15 = vpack.c.bf16 %v2028_v12, %v2026_v11 }
 0x57e   : > { %v2041_v17 = vpack.c.bf16 %v2029_v14, %v2027_v13  ;;  %v2003_v18 = vpop.f32.mrb[72].mxu1 }
 0x57f   : > { %v2004_v19 = vadd.f32 %v2003_v18, %v1908_v16  ;;  %v2005_v20 = vpop.f32.mrb[73].mxu1 }
 0x580   : > { %v2006_v22 = vadd.f32 %v2005_v20, %v1908_v16  ;;  %v2007_v23 = vpop.f32.mrb[74].mxu1  ;;  %2062 = vmatprep.subr.bf16.mxu0 %v2041_v17 }
 0x581   : > { %v2008_v24 = vadd.f32 %v2007_v23, %v1913_v21  ;;  %v2009_v25 = vpop.f32.mrb[75].mxu1  ;;  %2063 = vmatpush1.bf16.msra.mxu0 %v2040_v15  ;;  %v2030_v27 = vmax.f32 %v2004_v19, 0.0 }
 0x582   : > { %v2010_v26 = vadd.f32 %v2009_v25, %v1913_v21  ;;  %v2031_v29 = vmax.f32 %v2006_v22, 0.0 }
 0x583   : > { %v2032_v28 = vmax.f32 %v2008_v24, 0.0 }
 0x584   : > { %v2033_v30 = vmax.f32 %v2010_v26, 0.0 }
 0x585   : > { %v2042_v31 = vpack.c.bf16 %v2032_v28, %v2030_v27 }
 0x586   : > { %v2043_v33 = vpack.c.bf16 %v2033_v30, %v2031_v29  ;;  %v2013_v34 = vpop.f32.mrb[76].mxu1 }
 0x587   : > { %v2014_v35 = vadd.f32 %v2013_v34, %v1918_v32  ;;  %v2015_v36 = vpop.f32.mrb[77].mxu1 }
 0x588   : > { %v2016_v38 = vadd.f32 %v2015_v36, %v1918_v32  ;;  %v2017_v39 = vpop.f32.mrb[78].mxu1  ;;  %2064 = vmatprep.subr.bf16.mxu0 %v2043_v33 }
 0x589   : > { %v2018_v40 = vadd.f32 %v2017_v39, %v1923_v37  ;;  %v2019_v41 = vpop.f32.mrb[79].mxu1  ;;  %2065 = vmatpush1.bf16.msra.mxu0 %v2042_v31  ;;  %v2034_v43 = vmax.f32 %v2014_v35, 0.0 }
 0x58a   : > { %v2020_v42 = vadd.f32 %v2019_v41, %v1923_v37  ;;  %v2035_v45 = vmax.f32 %v2016_v38, 0.0 }
 0x58b   : > { %v2036_v44 = vmax.f32 %v2018_v40, 0.0 }
 0x58c   : > { %v2037_v46 = vmax.f32 %v2020_v42, 0.0 }
 0x58d   : > { %v2044_v47 = vpack.c.bf16 %v2036_v44, %v2034_v43 }
 0x58e   : > { %v2045_v48 = vpack.c.bf16 %v2037_v46, %v2035_v45 }
 0x590   : > { %2066 = vmatprep.subr.bf16.mxu0 %v2045_v48 }
 0x591   : > { %2067 = vmatpush1.bf16.msra.mxu0 %v2044_v47 }
 0x594   : > { %2247 = vmatmul.mubr.msk.bf16.vlgmr.msra.gmra.mrb[80].mxu0 %vm721_vm2, %v2046_v49 }
 0x667   : > { %v2094_v58 = vpop.f32.mrb[80].mxu0 }
 0x668   : > { %v2095_v59 = vadd.f32 %v2094_v58, %v2056_v56  ;;  %v2096_v60 = vpop.f32.mrb[81].mxu0 }
 0x669   : > { %v2097_v61 = vadd.f32 %v2096_v60, %v2056_v56  ;;  %v2098_v62 = vpop.f32.mrb[82].mxu0 }
 0x66a   : > { %v2101_v1 = vmax.f32 %v2095_v59, 0.0  ;;  %v2099_v63 = vpop.f32.mrb[83].mxu0 }
 0x66b   : > { %v2102_v2 = vmax.f32 %v2097_v61, 0.0 }
 0x66d   : > { %v2105_v3 = vcombine.low %v2101_v1, %v2102_v2 }
 0x66f   : > { %v2112_v4 = vrot.slane %v2105_v3, %v2111_v0 }
 0x671   : > { %v2119_v5 = vrot.slane %v2112_v4, %v2111_v0 }
 0x673   : > { %2125 = vst.msk [vmem:[%s415_s17] sm:$0x3] %vm2123_vm3, %v2119_v5 }
 0x674 PF: > { %s24_s23 = sadd.s32 1, %s2326_s23  }
 0x675   : > { %p21_p4 = scmp.ge.s32.totalorder %s24_s23, 4  }
 0x677   :  { %23 = sbr.rel (!%p21_p4) target bundleno = 3 (0x3), region = 98 }

</bundles_post_ra>
